<compile_context>
chip_gen: v7x
topology: tpu7x:2x2x1
jax: 0.10.0
libtpu: 0.0.40
codegen_flags: <defaults>
</compile_context>

<pallas_src>
import functools
import math

import jax
import jax.numpy as jnp
import numpy as np
from jax.experimental import pallas as pl
from jax.experimental.pallas import tpu as pltpu

_BIG = 3e38  # additive "outside region" sentinel for the min


# ---------------------------------------------------------------------------
# Host-side region computation (mirrors torch `_rpool` region enumeration).
# ---------------------------------------------------------------------------
def compute_regions(H, W, L):
    ovr = 0.4
    steps = np.array([2.0, 3.0, 4.0, 5.0, 6.0, 7.0], dtype=np.float32)
    w = min(W, H)
    b = (max(H, W) - w) / (steps - 1)
    idx = int(np.argmin(np.abs((w * w - w * b) / (w * w) - ovr)))
    if H < W:
        Wd, Hd = idx + 1, 0
    else:
        Wd, Hd = 0, idx + 1

    regions = []  # (h_start, h_end, w_start, w_end)
    for l in L:
        if l == 1:
            regions.append((0, H, 0, W))
            continue
        wl = math.floor(2 * w / (l + 1))
        wl2 = math.floor(wl / 2 - 1)
        bW = (W - wl) / (l + Wd - 1) if l + Wd > 1 else 0
        cenW = [int(math.floor(wl2 + k * bW)) - wl2 for k in range(l + Wd)]
        bH = (H - wl) / (l + Hd - 1) if l + Hd > 1 else 0
        cenH = [int(math.floor(wl2 + k * bH)) - wl2 for k in range(l + Hd)]
        for i in cenH:
            for j in cenW:
                if wl == 0:
                    continue
                regions.append((i, i + wl, j, j + wl))
    return regions


def _round_up(a, b):
    return (a + b - 1) // b * b


def _int_pow(t, n):
    """x**n for static positive integer n via exponentiation-by-squaring (VPU muls)."""
    result = None
    base = t
    while n > 0:
        if n & 1:
            result = base if result is None else result * base
        n >>= 1
        if n:
            base = base * base
    return result


# ---------------------------------------------------------------------------
# Pallas kernel: one grid step = one row tile; fully-unrolled loop over regions.
#   x_ref       : (rows, HW_pad)  native dtype
#   maskw_ref   : (R_pad8, HW_pad) f32  -- 1/area inside region, 0 outside/pad
#   addmask_ref : (R_pad8, HW_pad) f32  -- 0 inside region, +3e38 outside/pad
#   o_ref       : (rows, 1) f32
#   acc_ref     : (rows, 1) f32 scratch accumulator
#   extra[0]    : (rows, HW_pad) f32 scratch (only when input needs an f32 cast)
# ---------------------------------------------------------------------------
def rgem_kernel(x_ref, maskw_ref, addmask_ref, o_ref, acc_ref, *extra,
                R, p, eps, p_int, needs_cast):
    if needs_cast:
        xf32_ref = extra[0]
        xf32_ref[...] = x_ref[...].astype(jnp.float32)  # cast once per tile
        src = xf32_ref
    else:
        src = x_ref

    acc_ref[...] = jnp.zeros_like(acc_ref)
    inv_p = 1.0 / p

    # R is static and small (~19 for L=(1,2,3)); full unroll -> static mask
    # slices and scheduler visibility across independent region chains.
    for r in range(R):
        x = src[...]                                  # (rows, HW_pad) f32
        addrow = addmask_ref[pl.ds(r, 1), :]          # (1, HW_pad)
        wrow = maskw_ref[pl.ds(r, 1), :]              # (1, HW_pad)

        # Per-row min over the region, clamped to <= 0 (torch: min().clamp(max=0)).
        m = jnp.minimum(jnp.min(x + addrow, axis=1, keepdims=True), 0.0)

        # GeM over the region: mean((x + m).clamp(min=eps) ** p) ** (1/p) - m.
        t = jnp.maximum(x + m, jnp.float32(eps))
        if p_int is not None:
            y = _int_pow(t, p_int)                    # VPU multiplies, no EUP pow
        else:
            y = t ** jnp.float32(p)
        # Weighted sum with 1/area weights == region mean; padded cols weigh 0.
        mean = jnp.sum(y * wrow, axis=1, keepdims=True)
        acc_ref[...] += mean ** jnp.float32(inv_p) - m

    o_ref[...] = acc_ref[...]


# ---------------------------------------------------------------------------
# Wrapper
# ---------------------------------------------------------------------------
def rgem(x, L=(1, 2, 3), p=3.0, eps=1e-6):
    B, C, H, W = x.shape
    BC, HW = B * C, H * W
    HW_pad = _round_up(HW, 128)

    # Host-side region enumeration + mask tables.
    regions = compute_regions(H, W, list(L))
    R = len(regions)
    if R == 0:
        return jnp.zeros((B, C), x.dtype)

    R_pad8 = _round_up(R, 8)
    maskw_np = np.zeros((R_pad8, HW_pad), dtype=np.float32)
    addmask_np = np.full((R_pad8, HW_pad), _BIG, dtype=np.float32)
    for r, (i0, i1, j0, j1) in enumerate(regions):
        i0c, i1c = max(i0, 0), min(i1, H)
        j0c, j1c = max(j0, 0), min(j1, W)
        cnt = (i1c - i0c) * (j1c - j0c)
        if cnt <= 0:
            continue
        m2 = np.zeros((H, W), dtype=np.float32)
        m2[i0c:i1c, j0c:j1c] = 1.0
        flat = m2.reshape(-1)
        maskw_np[r, :HW] = flat / float(cnt)
        addmask_np[r, :HW] = (1.0 - flat) * _BIG
    maskw = jnp.asarray(maskw_np)
    addmask = jnp.asarray(addmask_np)

    needs_cast = x.dtype != jnp.float32
    itemsize = jnp.dtype(x.dtype).itemsize

    # Row-tile sizing: double-buffered native tile + (optional) f32 scratch
    # kept under ~32 MiB (safe on v5e/v6e/v7x scoped VMEM with the limit below).
    per_row = HW_pad * itemsize * 2 + (HW_pad * 4 if needs_cast else 0) + 16
    budget = 32 * 1024 * 1024
    max_rows = max(8, (budget // per_row) // 8 * 8)
    bc8 = _round_up(BC, 8)
    rows = max(8, (min(max_rows, bc8) // 8) * 8)
    # Prefer >= 2 grid steps when there's enough work (v7x: 2 TCs share the
    # single "parallel" grid axis; a 1-step grid would idle one core).
    if rows >= bc8 and bc8 >= 16:
        rows = max(8, _round_up(bc8 // 2, 8))
    BC_pad = _round_up(BC, rows)

    # Native-dtype reshape + pad (no f32 pre-cast; kernel upcasts once per tile).
    x2 = x.reshape(BC, HW)
    if BC_pad != BC or HW_pad != HW:
        x2 = jnp.pad(x2, ((0, BC_pad - BC), (0, HW_pad - HW)))

    p = float(p)
    p_round = round(p)
    p_int = int(p_round) if (abs(p - p_round) < 1e-12 and 1 <= p_round <= 16) else None

    kernel = functools.partial(
        rgem_kernel, R=R, p=p, eps=float(eps), p_int=p_int, needs_cast=needs_cast)

    scratch_shapes = [pltpu.VMEM((rows, 1), jnp.float32)]
    if needs_cast:
        scratch_shapes.append(pltpu.VMEM((rows, HW_pad), jnp.float32))

    # VMEM limit: resident estimate + headroom, capped well under v7x physical.
    x_bytes = rows * HW_pad * itemsize * 2
    cast_bytes = rows * HW_pad * 4 if needs_cast else 0
    mask_bytes = 2 * (R_pad8 * HW_pad * 4) * 2
    vmem_limit = int(min(48 * 1024 * 1024,
                         max(32 * 1024 * 1024,
                             x_bytes + cast_bytes + mask_bytes + 4 * 1024 * 1024)))

    out = pl.pallas_call(
        kernel,
        out_shape=jax.ShapeDtypeStruct((BC_pad, 1), jnp.float32),
        grid_spec=pltpu.PrefetchScalarGridSpec(
            num_scalar_prefetch=0,
            grid=(BC_pad // rows,),
            in_specs=[
                pl.BlockSpec((rows, HW_pad), lambda i: (i, 0)),
                pl.BlockSpec((R_pad8, HW_pad), lambda i: (0, 0)),  # tiny, resident
                pl.BlockSpec((R_pad8, HW_pad), lambda i: (0, 0)),  # tiny, resident
            ],
            out_specs=pl.BlockSpec((rows, 1), lambda i: (i, 0)),
            scratch_shapes=scratch_shapes,
        ),
        compiler_params=pltpu.CompilerParams(
            dimension_semantics=("parallel",),
            vmem_limit_bytes=vmem_limit,
        ),
    )(x2, maskw, addmask)

    return out[:BC, 0].reshape(B, C).astype(x.dtype)


# ---------------------------------------------------------------------------
# Pure-JAX reference (mirrors the PyTorch code) for a correctness check.
# ---------------------------------------------------------------------------
def rgem_reference(x, L=(1, 2, 3), p=3.0, eps=1e-6):
    B, C, H, W = x.shape
    regions = compute_regions(H, W, list(L))
    out = jnp.zeros((B, C), jnp.float32)
    xf = x.astype(jnp.float32)
    for (i0, i1, j0, j1) in regions:
        f = xf[:, :, i0:i1, j0:j1]
        m = jnp.minimum(jnp.min(f, axis=(2, 3), keepdims=True), 0.0)
        mean = jnp.mean(jnp.maximum(f + m, eps) ** p, axis=(2, 3))
        out = out + mean ** (1.0 / p) - m[:, :, 0, 0]
    return out.astype(x.dtype)


if __name__ == "__main__":
    key = jax.random.PRNGKey(0)
    x = jax.random.normal(key, (2, 4, 16, 16), dtype=jnp.float32)

    out = rgem(x)
    jax.block_until_ready(out)

    ref = rgem_reference(x)
    np.testing.assert_allclose(np.asarray(out), np.asarray(ref), rtol=1e-3, atol=1e-3)

    print("KERNEL_OK")
</pallas_src>

<mosaic_0001>
module attributes {stable_mosaic.version = 11 : i64} {
  func.func @rgem_kernel(%arg0: i32, %arg1: memref<8x256xf32, #tpu.memory_space<vmem>>, %arg2: memref<24x256xf32, #tpu.memory_space<vmem>>, %arg3: memref<24x256xf32, #tpu.memory_space<vmem>>, %arg4: memref<8x1xf32, #tpu.memory_space<vmem>>, %arg5: memref<8x1xf32, #tpu.memory_space<vmem>>) attributes {dimension_semantics = [#tpu.dimension_semantics<parallel>], iteration_bounds = array<i64: 1>, scalar_prefetch = 0 : i64, scratch_operands = 1 : i64, tpu.core_type = #tpu.core_type<tc>, window_params = [{transform_indices = @transform_0, window_bounds = array<i64: 8, 256>}, {pipeline_mode = #tpu.pipeline_mode<synchronous>, transform_indices = @transform_1, window_bounds = array<i64: 24, 256>}, {pipeline_mode = #tpu.pipeline_mode<synchronous>, transform_indices = @transform_2, window_bounds = array<i64: 24, 256>}, {transform_indices = @transform_3, window_bounds = array<i64: 8, 1>}]} {
    %cst = arith.constant 0.000000e+00 : f32
    %0 = vector.broadcast %cst : f32 to vector<8x1xf32>
    %c0 = arith.constant 0 : index
    %c0_0 = arith.constant 0 : index
    %1 = vector.load %arg5[%c0, %c0_0] : memref<8x1xf32, #tpu.memory_space<vmem>>, vector<8x1xf32>
    tpu.vector_store %arg5[%c0, %c0_0], %0 {strides = array<i32>} : memref<8x1xf32, #tpu.memory_space<vmem>>, vector<8x1xf32>,
    %c0_1 = arith.constant 0 : index
    %c0_2 = arith.constant 0 : index
    %2 = vector.load %arg1[%c0_1, %c0_2] : memref<8x256xf32, #tpu.memory_space<vmem>>, vector<8x256xf32>
    %c0_3 = arith.constant 0 : index
    %c0_4 = arith.constant 0 : index
    %3 = vector.load %arg3[%c0_3, %c0_4] : memref<24x256xf32, #tpu.memory_space<vmem>>, vector<1x256xf32>
    %c0_5 = arith.constant 0 : index
    %c0_6 = arith.constant 0 : index
    %4 = vector.load %arg2[%c0_5, %c0_6] : memref<24x256xf32, #tpu.memory_space<vmem>>, vector<1x256xf32>
    %5 = vector.broadcast %3 : vector<1x256xf32> to vector<8x256xf32>
    %6 = arith.addf %2, %5 : vector<8x256xf32>
    %cst_7 = arith.constant dense<0x7F800000> : vector<8xf32>
    %7 = vector.multi_reduction <minimumf>, %6, %cst_7 [1] : vector<8x256xf32> to vector<8xf32>
    %8 = vector.shape_cast %7 : vector<8xf32> to vector<8x1xf32>
    %cst_8 = arith.constant 0.000000e+00 : f32
    %9 = vector.broadcast %cst_8 : f32 to vector<8x1xf32>
    %10 = arith.minimumf %8, %9 : vector<8x1xf32>
    %11 = vector.broadcast %10 : vector<8x1xf32> to vector<8x256xf32>
    %12 = arith.addf %2, %11 : vector<8x256xf32>
    %cst_9 = arith.constant 9.99999997E-7 : f32
    %13 = vector.broadcast %cst_9 : f32 to vector<8x256xf32>
    %14 = arith.maximumf %12, %13 : vector<8x256xf32>
    %15 = arith.mulf %14, %14 : vector<8x256xf32>
    %16 = arith.mulf %14, %15 : vector<8x256xf32>
    %17 = vector.broadcast %4 : vector<1x256xf32> to vector<8x256xf32>
    %18 = arith.mulf %16, %17 : vector<8x256xf32>
    %cst_10 = arith.constant dense<0.000000e+00> : vector<8xf32>
    %19 = vector.multi_reduction <add>, %18, %cst_10 [1] : vector<8x256xf32> to vector<8xf32>
    %20 = vector.shape_cast %19 : vector<8xf32> to vector<8x1xf32>
    %c0_11 = arith.constant 0 : index
    %c0_12 = arith.constant 0 : index
    %21 = vector.load %arg5[%c0_11, %c0_12] : memref<8x1xf32, #tpu.memory_space<vmem>>, vector<8x1xf32>
    %cst_13 = arith.constant 0.333333343 : f32
    %22 = vector.broadcast %cst_13 : f32 to vector<8x1xf32>
    %23 = math.powf %20, %22 : vector<8x1xf32>
    %24 = arith.subf %23, %10 : vector<8x1xf32>
    %25 = arith.addf %21, %24 : vector<8x1xf32>
    %c0_14 = arith.constant 0 : index
    %c0_15 = arith.constant 0 : index
    %26 = vector.load %arg5[%c0_14, %c0_15] : memref<8x1xf32, #tpu.memory_space<vmem>>, vector<8x1xf32>
    tpu.vector_store %arg5[%c0_14, %c0_15], %25 {strides = array<i32>} : memref<8x1xf32, #tpu.memory_space<vmem>>, vector<8x1xf32>,
    %c0_16 = arith.constant 0 : index
    %c0_17 = arith.constant 0 : index
    %27 = vector.load %arg1[%c0_16, %c0_17] : memref<8x256xf32, #tpu.memory_space<vmem>>, vector<8x256xf32>
    %c1 = arith.constant 1 : index
    %c0_18 = arith.constant 0 : index
    %28 = vector.load %arg3[%c1, %c0_18] : memref<24x256xf32, #tpu.memory_space<vmem>>, vector<1x256xf32>
    %c1_19 = arith.constant 1 : index
    %c0_20 = arith.constant 0 : index
    %29 = vector.load %arg2[%c1_19, %c0_20] : memref<24x256xf32, #tpu.memory_space<vmem>>, vector<1x256xf32>
    %30 = vector.broadcast %28 : vector<1x256xf32> to vector<8x256xf32>
    %31 = arith.addf %27, %30 : vector<8x256xf32>
    %cst_21 = arith.constant dense<0x7F800000> : vector<8xf32>
    %32 = vector.multi_reduction <minimumf>, %31, %cst_21 [1] : vector<8x256xf32> to vector<8xf32>
    %33 = vector.shape_cast %32 : vector<8xf32> to vector<8x1xf32>
    %cst_22 = arith.constant 0.000000e+00 : f32
    %34 = vector.broadcast %cst_22 : f32 to vector<8x1xf32>
    %35 = arith.minimumf %33, %34 : vector<8x1xf32>
    %36 = vector.broadcast %35 : vector<8x1xf32> to vector<8x256xf32>
    %37 = arith.addf %27, %36 : vector<8x256xf32>
    %cst_23 = arith.constant 9.99999997E-7 : f32
    %38 = vector.broadcast %cst_23 : f32 to vector<8x256xf32>
    %39 = arith.maximumf %37, %38 : vector<8x256xf32>
    %40 = arith.mulf %39, %39 : vector<8x256xf32>
    %41 = arith.mulf %39, %40 : vector<8x256xf32>
    %42 = vector.broadcast %29 : vector<1x256xf32> to vector<8x256xf32>
    %43 = arith.mulf %41, %42 : vector<8x256xf32>
    %cst_24 = arith.constant dense<0.000000e+00> : vector<8xf32>
    %44 = vector.multi_reduction <add>, %43, %cst_24 [1] : vector<8x256xf32> to vector<8xf32>
    %45 = vector.shape_cast %44 : vector<8xf32> to vector<8x1xf32>
    %c0_25 = arith.constant 0 : index
    %c0_26 = arith.constant 0 : index
    %46 = vector.load %arg5[%c0_25, %c0_26] : memref<8x1xf32, #tpu.memory_space<vmem>>, vector<8x1xf32>
    %cst_27 = arith.constant 0.333333343 : f32
    %47 = vector.broadcast %cst_27 : f32 to vector<8x1xf32>
    %48 = math.powf %45, %47 : vector<8x1xf32>
    %49 = arith.subf %48, %35 : vector<8x1xf32>
    %50 = arith.addf %46, %49 : vector<8x1xf32>
    %c0_28 = arith.constant 0 : index
    %c0_29 = arith.constant 0 : index
    %51 = vector.load %arg5[%c0_28, %c0_29] : memref<8x1xf32, #tpu.memory_space<vmem>>, vector<8x1xf32>
    tpu.vector_store %arg5[%c0_28, %c0_29], %50 {strides = array<i32>} : memref<8x1xf32, #tpu.memory_space<vmem>>, vector<8x1xf32>,
    %c0_30 = arith.constant 0 : index
    %c0_31 = arith.constant 0 : index
    %52 = vector.load %arg1[%c0_30, %c0_31] : memref<8x256xf32, #tpu.memory_space<vmem>>, vector<8x256xf32>
    %c2 = arith.constant 2 : index
    %c0_32 = arith.constant 0 : index
    %53 = vector.load %arg3[%c2, %c0_32] : memref<24x256xf32, #tpu.memory_space<vmem>>, vector<1x256xf32>
    %c2_33 = arith.constant 2 : index
    %c0_34 = arith.constant 0 : index
    %54 = vector.load %arg2[%c2_33, %c0_34] : memref<24x256xf32, #tpu.memory_space<vmem>>, vector<1x256xf32>
    %55 = vector.broadcast %53 : vector<1x256xf32> to vector<8x256xf32>
    %56 = arith.addf %52, %55 : vector<8x256xf32>
    %cst_35 = arith.constant dense<0x7F800000> : vector<8xf32>
    %57 = vector.multi_reduction <minimumf>, %56, %cst_35 [1] : vector<8x256xf32> to vector<8xf32>
    %58 = vector.shape_cast %57 : vector<8xf32> to vector<8x1xf32>
    %cst_36 = arith.constant 0.000000e+00 : f32
    %59 = vector.broadcast %cst_36 : f32 to vector<8x1xf32>
    %60 = arith.minimumf %58, %59 : vector<8x1xf32>
    %61 = vector.broadcast %60 : vector<8x1xf32> to vector<8x256xf32>
    %62 = arith.addf %52, %61 : vector<8x256xf32>
    %cst_37 = arith.constant 9.99999997E-7 : f32
    %63 = vector.broadcast %cst_37 : f32 to vector<8x256xf32>
    %64 = arith.maximumf %62, %63 : vector<8x256xf32>
    %65 = arith.mulf %64, %64 : vector<8x256xf32>
    %66 = arith.mulf %64, %65 : vector<8x256xf32>
    %67 = vector.broadcast %54 : vector<1x256xf32> to vector<8x256xf32>
    %68 = arith.mulf %66, %67 : vector<8x256xf32>
    %cst_38 = arith.constant dense<0.000000e+00> : vector<8xf32>
    %69 = vector.multi_reduction <add>, %68, %cst_38 [1] : vector<8x256xf32> to vector<8xf32>
    %70 = vector.shape_cast %69 : vector<8xf32> to vector<8x1xf32>
    %c0_39 = arith.constant 0 : index
    %c0_40 = arith.constant 0 : index
    %71 = vector.load %arg5[%c0_39, %c0_40] : memref<8x1xf32, #tpu.memory_space<vmem>>, vector<8x1xf32>
    %cst_41 = arith.constant 0.333333343 : f32
    %72 = vector.broadcast %cst_41 : f32 to vector<8x1xf32>
    %73 = math.powf %70, %72 : vector<8x1xf32>
    %74 = arith.subf %73, %60 : vector<8x1xf32>
    %75 = arith.addf %71, %74 : vector<8x1xf32>
    %c0_42 = arith.constant 0 : index
    %c0_43 = arith.constant 0 : index
    %76 = vector.load %arg5[%c0_42, %c0_43] : memref<8x1xf32, #tpu.memory_space<vmem>>, vector<8x1xf32>
    tpu.vector_store %arg5[%c0_42, %c0_43], %75 {strides = array<i32>} : memref<8x1xf32, #tpu.memory_space<vmem>>, vector<8x1xf32>,
    %c0_44 = arith.constant 0 : index
    %c0_45 = arith.constant 0 : index
    %77 = vector.load %arg1[%c0_44, %c0_45] : memref<8x256xf32, #tpu.memory_space<vmem>>, vector<8x256xf32>
    %c3 = arith.constant 3 : index
    %c0_46 = arith.constant 0 : index
    %78 = vector.load %arg3[%c3, %c0_46] : memref<24x256xf32, #tpu.memory_space<vmem>>, vector<1x256xf32>
    %c3_47 = arith.constant 3 : index
    %c0_48 = arith.constant 0 : index
    %79 = vector.load %arg2[%c3_47, %c0_48] : memref<24x256xf32, #tpu.memory_space<vmem>>, vector<1x256xf32>
    %80 = vector.broadcast %78 : vector<1x256xf32> to vector<8x256xf32>
    %81 = arith.addf %77, %80 : vector<8x256xf32>
    %cst_49 = arith.constant dense<0x7F800000> : vector<8xf32>
    %82 = vector.multi_reduction <minimumf>, %81, %cst_49 [1] : vector<8x256xf32> to vector<8xf32>
    %83 = vector.shape_cast %82 : vector<8xf32> to vector<8x1xf32>
    %cst_50 = arith.constant 0.000000e+00 : f32
    %84 = vector.broadcast %cst_50 : f32 to vector<8x1xf32>
    %85 = arith.minimumf %83, %84 : vector<8x1xf32>
    %86 = vector.broadcast %85 : vector<8x1xf32> to vector<8x256xf32>
    %87 = arith.addf %77, %86 : vector<8x256xf32>
    %cst_51 = arith.constant 9.99999997E-7 : f32
    %88 = vector.broadcast %cst_51 : f32 to vector<8x256xf32>
    %89 = arith.maximumf %87, %88 : vector<8x256xf32>
    %90 = arith.mulf %89, %89 : vector<8x256xf32>
    %91 = arith.mulf %89, %90 : vector<8x256xf32>
    %92 = vector.broadcast %79 : vector<1x256xf32> to vector<8x256xf32>
    %93 = arith.mulf %91, %92 : vector<8x256xf32>
    %cst_52 = arith.constant dense<0.000000e+00> : vector<8xf32>
    %94 = vector.multi_reduction <add>, %93, %cst_52 [1] : vector<8x256xf32> to vector<8xf32>
    %95 = vector.shape_cast %94 : vector<8xf32> to vector<8x1xf32>
    %c0_53 = arith.constant 0 : index
    %c0_54 = arith.constant 0 : index
    %96 = vector.load %arg5[%c0_53, %c0_54] : memref<8x1xf32, #tpu.memory_space<vmem>>, vector<8x1xf32>
    %cst_55 = arith.constant 0.333333343 : f32
    %97 = vector.broadcast %cst_55 : f32 to vector<8x1xf32>
    %98 = math.powf %95, %97 : vector<8x1xf32>
    %99 = arith.subf %98, %85 : vector<8x1xf32>
    %100 = arith.addf %96, %99 : vector<8x1xf32>
    %c0_56 = arith.constant 0 : index
    %c0_57 = arith.constant 0 : index
    %101 = vector.load %arg5[%c0_56, %c0_57] : memref<8x1xf32, #tpu.memory_space<vmem>>, vector<8x1xf32>
    tpu.vector_store %arg5[%c0_56, %c0_57], %100 {strides = array<i32>} : memref<8x1xf32, #tpu.memory_space<vmem>>, vector<8x1xf32>,
    %c0_58 = arith.constant 0 : index
    %c0_59 = arith.constant 0 : index
    %102 = vector.load %arg1[%c0_58, %c0_59] : memref<8x256xf32, #tpu.memory_space<vmem>>, vector<8x256xf32>
    %c4 = arith.constant 4 : index
    %c0_60 = arith.constant 0 : index
    %103 = vector.load %arg3[%c4, %c0_60] : memref<24x256xf32, #tpu.memory_space<vmem>>, vector<1x256xf32>
    %c4_61 = arith.constant 4 : index
    %c0_62 = arith.constant 0 : index
    %104 = vector.load %arg2[%c4_61, %c0_62] : memref<24x256xf32, #tpu.memory_space<vmem>>, vector<1x256xf32>
    %105 = vector.broadcast %103 : vector<1x256xf32> to vector<8x256xf32>
    %106 = arith.addf %102, %105 : vector<8x256xf32>
    %cst_63 = arith.constant dense<0x7F800000> : vector<8xf32>
    %107 = vector.multi_reduction <minimumf>, %106, %cst_63 [1] : vector<8x256xf32> to vector<8xf32>
    %108 = vector.shape_cast %107 : vector<8xf32> to vector<8x1xf32>
    %cst_64 = arith.constant 0.000000e+00 : f32
    %109 = vector.broadcast %cst_64 : f32 to vector<8x1xf32>
    %110 = arith.minimumf %108, %109 : vector<8x1xf32>
    %111 = vector.broadcast %110 : vector<8x1xf32> to vector<8x256xf32>
    %112 = arith.addf %102, %111 : vector<8x256xf32>
    %cst_65 = arith.constant 9.99999997E-7 : f32
    %113 = vector.broadcast %cst_65 : f32 to vector<8x256xf32>
    %114 = arith.maximumf %112, %113 : vector<8x256xf32>
    %115 = arith.mulf %114, %114 : vector<8x256xf32>
    %116 = arith.mulf %114, %115 : vector<8x256xf32>
    %117 = vector.broadcast %104 : vector<1x256xf32> to vector<8x256xf32>
    %118 = arith.mulf %116, %117 : vector<8x256xf32>
    %cst_66 = arith.constant dense<0.000000e+00> : vector<8xf32>
    %119 = vector.multi_reduction <add>, %118, %cst_66 [1] : vector<8x256xf32> to vector<8xf32>
    %120 = vector.shape_cast %119 : vector<8xf32> to vector<8x1xf32>
    %c0_67 = arith.constant 0 : index
    %c0_68 = arith.constant 0 : index
    %121 = vector.load %arg5[%c0_67, %c0_68] : memref<8x1xf32, #tpu.memory_space<vmem>>, vector<8x1xf32>
    %cst_69 = arith.constant 0.333333343 : f32
    %122 = vector.broadcast %cst_69 : f32 to vector<8x1xf32>
    %123 = math.powf %120, %122 : vector<8x1xf32>
    %124 = arith.subf %123, %110 : vector<8x1xf32>
    %125 = arith.addf %121, %124 : vector<8x1xf32>
    %c0_70 = arith.constant 0 : index
    %c0_71 = arith.constant 0 : index
    %126 = vector.load %arg5[%c0_70, %c0_71] : memref<8x1xf32, #tpu.memory_space<vmem>>, vector<8x1xf32>
    tpu.vector_store %arg5[%c0_70, %c0_71], %125 {strides = array<i32>} : memref<8x1xf32, #tpu.memory_space<vmem>>, vector<8x1xf32>,
    %c0_72 = arith.constant 0 : index
    %c0_73 = arith.constant 0 : index
    %127 = vector.load %arg1[%c0_72, %c0_73] : memref<8x256xf32, #tpu.memory_space<vmem>>, vector<8x256xf32>
    %c5 = arith.constant 5 : index
    %c0_74 = arith.constant 0 : index
    %128 = vector.load %arg3[%c5, %c0_74] : memref<24x256xf32, #tpu.memory_space<vmem>>, vector<1x256xf32>
    %c5_75 = arith.constant 5 : index
    %c0_76 = arith.constant 0 : index
    %129 = vector.load %arg2[%c5_75, %c0_76] : memref<24x256xf32, #tpu.memory_space<vmem>>, vector<1x256xf32>
    %130 = vector.broadcast %128 : vector<1x256xf32> to vector<8x256xf32>
    %131 = arith.addf %127, %130 : vector<8x256xf32>
    %cst_77 = arith.constant dense<0x7F800000> : vector<8xf32>
    %132 = vector.multi_reduction <minimumf>, %131, %cst_77 [1] : vector<8x256xf32> to vector<8xf32>
    %133 = vector.shape_cast %132 : vector<8xf32> to vector<8x1xf32>
    %cst_78 = arith.constant 0.000000e+00 : f32
    %134 = vector.broadcast %cst_78 : f32 to vector<8x1xf32>
    %135 = arith.minimumf %133, %134 : vector<8x1xf32>
    %136 = vector.broadcast %135 : vector<8x1xf32> to vector<8x256xf32>
    %137 = arith.addf %127, %136 : vector<8x256xf32>
    %cst_79 = arith.constant 9.99999997E-7 : f32
    %138 = vector.broadcast %cst_79 : f32 to vector<8x256xf32>
    %139 = arith.maximumf %137, %138 : vector<8x256xf32>
    %140 = arith.mulf %139, %139 : vector<8x256xf32>
    %141 = arith.mulf %139, %140 : vector<8x256xf32>
    %142 = vector.broadcast %129 : vector<1x256xf32> to vector<8x256xf32>
    %143 = arith.mulf %141, %142 : vector<8x256xf32>
    %cst_80 = arith.constant dense<0.000000e+00> : vector<8xf32>
    %144 = vector.multi_reduction <add>, %143, %cst_80 [1] : vector<8x256xf32> to vector<8xf32>
    %145 = vector.shape_cast %144 : vector<8xf32> to vector<8x1xf32>
    %c0_81 = arith.constant 0 : index
    %c0_82 = arith.constant 0 : index
    %146 = vector.load %arg5[%c0_81, %c0_82] : memref<8x1xf32, #tpu.memory_space<vmem>>, vector<8x1xf32>
    %cst_83 = arith.constant 0.333333343 : f32
    %147 = vector.broadcast %cst_83 : f32 to vector<8x1xf32>
    %148 = math.powf %145, %147 : vector<8x1xf32>
    %149 = arith.subf %148, %135 : vector<8x1xf32>
    %150 = arith.addf %146, %149 : vector<8x1xf32>
    %c0_84 = arith.constant 0 : index
    %c0_85 = arith.constant 0 : index
    %151 = vector.load %arg5[%c0_84, %c0_85] : memref<8x1xf32, #tpu.memory_space<vmem>>, vector<8x1xf32>
    tpu.vector_store %arg5[%c0_84, %c0_85], %150 {strides = array<i32>} : memref<8x1xf32, #tpu.memory_space<vmem>>, vector<8x1xf32>,
    %c0_86 = arith.constant 0 : index
    %c0_87 = arith.constant 0 : index
    %152 = vector.load %arg1[%c0_86, %c0_87] : memref<8x256xf32, #tpu.memory_space<vmem>>, vector<8x256xf32>
    %c6 = arith.constant 6 : index
    %c0_88 = arith.constant 0 : index
    %153 = vector.load %arg3[%c6, %c0_88] : memref<24x256xf32, #tpu.memory_space<vmem>>, vector<1x256xf32>
    %c6_89 = arith.constant 6 : index
    %c0_90 = arith.constant 0 : index
    %154 = vector.load %arg2[%c6_89, %c0_90] : memref<24x256xf32, #tpu.memory_space<vmem>>, vector<1x256xf32>
    %155 = vector.broadcast %153 : vector<1x256xf32> to vector<8x256xf32>
    %156 = arith.addf %152, %155 : vector<8x256xf32>
    %cst_91 = arith.constant dense<0x7F800000> : vector<8xf32>
    %157 = vector.multi_reduction <minimumf>, %156, %cst_91 [1] : vector<8x256xf32> to vector<8xf32>
    %158 = vector.shape_cast %157 : vector<8xf32> to vector<8x1xf32>
    %cst_92 = arith.constant 0.000000e+00 : f32
    %159 = vector.broadcast %cst_92 : f32 to vector<8x1xf32>
    %160 = arith.minimumf %158, %159 : vector<8x1xf32>
    %161 = vector.broadcast %160 : vector<8x1xf32> to vector<8x256xf32>
    %162 = arith.addf %152, %161 : vector<8x256xf32>
    %cst_93 = arith.constant 9.99999997E-7 : f32
    %163 = vector.broadcast %cst_93 : f32 to vector<8x256xf32>
    %164 = arith.maximumf %162, %163 : vector<8x256xf32>
    %165 = arith.mulf %164, %164 : vector<8x256xf32>
    %166 = arith.mulf %164, %165 : vector<8x256xf32>
    %167 = vector.broadcast %154 : vector<1x256xf32> to vector<8x256xf32>
    %168 = arith.mulf %166, %167 : vector<8x256xf32>
    %cst_94 = arith.constant dense<0.000000e+00> : vector<8xf32>
    %169 = vector.multi_reduction <add>, %168, %cst_94 [1] : vector<8x256xf32> to vector<8xf32>
    %170 = vector.shape_cast %169 : vector<8xf32> to vector<8x1xf32>
    %c0_95 = arith.constant 0 : index
    %c0_96 = arith.constant 0 : index
    %171 = vector.load %arg5[%c0_95, %c0_96] : memref<8x1xf32, #tpu.memory_space<vmem>>, vector<8x1xf32>
    %cst_97 = arith.constant 0.333333343 : f32
    %172 = vector.broadcast %cst_97 : f32 to vector<8x1xf32>
    %173 = math.powf %170, %172 : vector<8x1xf32>
    %174 = arith.subf %173, %160 : vector<8x1xf32>
    %175 = arith.addf %171, %174 : vector<8x1xf32>
    %c0_98 = arith.constant 0 : index
    %c0_99 = arith.constant 0 : index
    %176 = vector.load %arg5[%c0_98, %c0_99] : memref<8x1xf32, #tpu.memory_space<vmem>>, vector<8x1xf32>
    tpu.vector_store %arg5[%c0_98, %c0_99], %175 {strides = array<i32>} : memref<8x1xf32, #tpu.memory_space<vmem>>, vector<8x1xf32>,
    %c0_100 = arith.constant 0 : index
    %c0_101 = arith.constant 0 : index
    %177 = vector.load %arg1[%c0_100, %c0_101] : memref<8x256xf32, #tpu.memory_space<vmem>>, vector<8x256xf32>
    %c7 = arith.constant 7 : index
    %c0_102 = arith.constant 0 : index
    %178 = vector.load %arg3[%c7, %c0_102] : memref<24x256xf32, #tpu.memory_space<vmem>>, vector<1x256xf32>
    %c7_103 = arith.constant 7 : index
    %c0_104 = arith.constant 0 : index
    %179 = vector.load %arg2[%c7_103, %c0_104] : memref<24x256xf32, #tpu.memory_space<vmem>>, vector<1x256xf32>
    %180 = vector.broadcast %178 : vector<1x256xf32> to vector<8x256xf32>
    %181 = arith.addf %177, %180 : vector<8x256xf32>
    %cst_105 = arith.constant dense<0x7F800000> : vector<8xf32>
    %182 = vector.multi_reduction <minimumf>, %181, %cst_105 [1] : vector<8x256xf32> to vector<8xf32>
    %183 = vector.shape_cast %182 : vector<8xf32> to vector<8x1xf32>
    %cst_106 = arith.constant 0.000000e+00 : f32
    %184 = vector.broadcast %cst_106 : f32 to vector<8x1xf32>
    %185 = arith.minimumf %183, %184 : vector<8x1xf32>
    %186 = vector.broadcast %185 : vector<8x1xf32> to vector<8x256xf32>
    %187 = arith.addf %177, %186 : vector<8x256xf32>
    %cst_107 = arith.constant 9.99999997E-7 : f32
    %188 = vector.broadcast %cst_107 : f32 to vector<8x256xf32>
    %189 = arith.maximumf %187, %188 : vector<8x256xf32>
    %190 = arith.mulf %189, %189 : vector<8x256xf32>
    %191 = arith.mulf %189, %190 : vector<8x256xf32>
    %192 = vector.broadcast %179 : vector<1x256xf32> to vector<8x256xf32>
    %193 = arith.mulf %191, %192 : vector<8x256xf32>
    %cst_108 = arith.constant dense<0.000000e+00> : vector<8xf32>
    %194 = vector.multi_reduction <add>, %193, %cst_108 [1] : vector<8x256xf32> to vector<8xf32>
    %195 = vector.shape_cast %194 : vector<8xf32> to vector<8x1xf32>
    %c0_109 = arith.constant 0 : index
    %c0_110 = arith.constant 0 : index
    %196 = vector.load %arg5[%c0_109, %c0_110] : memref<8x1xf32, #tpu.memory_space<vmem>>, vector<8x1xf32>
    %cst_111 = arith.constant 0.333333343 : f32
    %197 = vector.broadcast %cst_111 : f32 to vector<8x1xf32>
    %198 = math.powf %195, %197 : vector<8x1xf32>
    %199 = arith.subf %198, %185 : vector<8x1xf32>
    %200 = arith.addf %196, %199 : vector<8x1xf32>
    %c0_112 = arith.constant 0 : index
    %c0_113 = arith.constant 0 : index
    %201 = vector.load %arg5[%c0_112, %c0_113] : memref<8x1xf32, #tpu.memory_space<vmem>>, vector<8x1xf32>
    tpu.vector_store %arg5[%c0_112, %c0_113], %200 {strides = array<i32>} : memref<8x1xf32, #tpu.memory_space<vmem>>, vector<8x1xf32>,
    %c0_114 = arith.constant 0 : index
    %c0_115 = arith.constant 0 : index
    %202 = vector.load %arg1[%c0_114, %c0_115] : memref<8x256xf32, #tpu.memory_space<vmem>>, vector<8x256xf32>
    %c8 = arith.constant 8 : index
    %c0_116 = arith.constant 0 : index
    %203 = vector.load %arg3[%c8, %c0_116] : memref<24x256xf32, #tpu.memory_space<vmem>>, vector<1x256xf32>
    %c8_117 = arith.constant 8 : index
    %c0_118 = arith.constant 0 : index
    %204 = vector.load %arg2[%c8_117, %c0_118] : memref<24x256xf32, #tpu.memory_space<vmem>>, vector<1x256xf32>
    %205 = vector.broadcast %203 : vector<1x256xf32> to vector<8x256xf32>
    %206 = arith.addf %202, %205 : vector<8x256xf32>
    %cst_119 = arith.constant dense<0x7F800000> : vector<8xf32>
    %207 = vector.multi_reduction <minimumf>, %206, %cst_119 [1] : vector<8x256xf32> to vector<8xf32>
    %208 = vector.shape_cast %207 : vector<8xf32> to vector<8x1xf32>
    %cst_120 = arith.constant 0.000000e+00 : f32
    %209 = vector.broadcast %cst_120 : f32 to vector<8x1xf32>
    %210 = arith.minimumf %208, %209 : vector<8x1xf32>
    %211 = vector.broadcast %210 : vector<8x1xf32> to vector<8x256xf32>
    %212 = arith.addf %202, %211 : vector<8x256xf32>
    %cst_121 = arith.constant 9.99999997E-7 : f32
    %213 = vector.broadcast %cst_121 : f32 to vector<8x256xf32>
    %214 = arith.maximumf %212, %213 : vector<8x256xf32>
    %215 = arith.mulf %214, %214 : vector<8x256xf32>
    %216 = arith.mulf %214, %215 : vector<8x256xf32>
    %217 = vector.broadcast %204 : vector<1x256xf32> to vector<8x256xf32>
    %218 = arith.mulf %216, %217 : vector<8x256xf32>
    %cst_122 = arith.constant dense<0.000000e+00> : vector<8xf32>
    %219 = vector.multi_reduction <add>, %218, %cst_122 [1] : vector<8x256xf32> to vector<8xf32>
    %220 = vector.shape_cast %219 : vector<8xf32> to vector<8x1xf32>
    %c0_123 = arith.constant 0 : index
    %c0_124 = arith.constant 0 : index
    %221 = vector.load %arg5[%c0_123, %c0_124] : memref<8x1xf32, #tpu.memory_space<vmem>>, vector<8x1xf32>
    %cst_125 = arith.constant 0.333333343 : f32
    %222 = vector.broadcast %cst_125 : f32 to vector<8x1xf32>
    %223 = math.powf %220, %222 : vector<8x1xf32>
    %224 = arith.subf %223, %210 : vector<8x1xf32>
    %225 = arith.addf %221, %224 : vector<8x1xf32>
    %c0_126 = arith.constant 0 : index
    %c0_127 = arith.constant 0 : index
    %226 = vector.load %arg5[%c0_126, %c0_127] : memref<8x1xf32, #tpu.memory_space<vmem>>, vector<8x1xf32>
    tpu.vector_store %arg5[%c0_126, %c0_127], %225 {strides = array<i32>} : memref<8x1xf32, #tpu.memory_space<vmem>>, vector<8x1xf32>,
    %c0_128 = arith.constant 0 : index
    %c0_129 = arith.constant 0 : index
    %227 = vector.load %arg1[%c0_128, %c0_129] : memref<8x256xf32, #tpu.memory_space<vmem>>, vector<8x256xf32>
    %c9 = arith.constant 9 : index
    %c0_130 = arith.constant 0 : index
    %228 = vector.load %arg3[%c9, %c0_130] : memref<24x256xf32, #tpu.memory_space<vmem>>, vector<1x256xf32>
    %c9_131 = arith.constant 9 : index
    %c0_132 = arith.constant 0 : index
    %229 = vector.load %arg2[%c9_131, %c0_132] : memref<24x256xf32, #tpu.memory_space<vmem>>, vector<1x256xf32>
    %230 = vector.broadcast %228 : vector<1x256xf32> to vector<8x256xf32>
    %231 = arith.addf %227, %230 : vector<8x256xf32>
    %cst_133 = arith.constant dense<0x7F800000> : vector<8xf32>
    %232 = vector.multi_reduction <minimumf>, %231, %cst_133 [1] : vector<8x256xf32> to vector<8xf32>
    %233 = vector.shape_cast %232 : vector<8xf32> to vector<8x1xf32>
    %cst_134 = arith.constant 0.000000e+00 : f32
    %234 = vector.broadcast %cst_134 : f32 to vector<8x1xf32>
    %235 = arith.minimumf %233, %234 : vector<8x1xf32>
    %236 = vector.broadcast %235 : vector<8x1xf32> to vector<8x256xf32>
    %237 = arith.addf %227, %236 : vector<8x256xf32>
    %cst_135 = arith.constant 9.99999997E-7 : f32
    %238 = vector.broadcast %cst_135 : f32 to vector<8x256xf32>
    %239 = arith.maximumf %237, %238 : vector<8x256xf32>
    %240 = arith.mulf %239, %239 : vector<8x256xf32>
    %241 = arith.mulf %239, %240 : vector<8x256xf32>
    %242 = vector.broadcast %229 : vector<1x256xf32> to vector<8x256xf32>
    %243 = arith.mulf %241, %242 : vector<8x256xf32>
    %cst_136 = arith.constant dense<0.000000e+00> : vector<8xf32>
    %244 = vector.multi_reduction <add>, %243, %cst_136 [1] : vector<8x256xf32> to vector<8xf32>
    %245 = vector.shape_cast %244 : vector<8xf32> to vector<8x1xf32>
    %c0_137 = arith.constant 0 : index
    %c0_138 = arith.constant 0 : index
    %246 = vector.load %arg5[%c0_137, %c0_138] : memref<8x1xf32, #tpu.memory_space<vmem>>, vector<8x1xf32>
    %cst_139 = arith.constant 0.333333343 : f32
    %247 = vector.broadcast %cst_139 : f32 to vector<8x1xf32>
    %248 = math.powf %245, %247 : vector<8x1xf32>
    %249 = arith.subf %248, %235 : vector<8x1xf32>
    %250 = arith.addf %246, %249 : vector<8x1xf32>
    %c0_140 = arith.constant 0 : index
    %c0_141 = arith.constant 0 : index
    %251 = vector.load %arg5[%c0_140, %c0_141] : memref<8x1xf32, #tpu.memory_space<vmem>>, vector<8x1xf32>
    tpu.vector_store %arg5[%c0_140, %c0_141], %250 {strides = array<i32>} : memref<8x1xf32, #tpu.memory_space<vmem>>, vector<8x1xf32>,
    %c0_142 = arith.constant 0 : index
    %c0_143 = arith.constant 0 : index
    %252 = vector.load %arg1[%c0_142, %c0_143] : memref<8x256xf32, #tpu.memory_space<vmem>>, vector<8x256xf32>
    %c10 = arith.constant 10 : index
    %c0_144 = arith.constant 0 : index
    %253 = vector.load %arg3[%c10, %c0_144] : memref<24x256xf32, #tpu.memory_space<vmem>>, vector<1x256xf32>
    %c10_145 = arith.constant 10 : index
    %c0_146 = arith.constant 0 : index
    %254 = vector.load %arg2[%c10_145, %c0_146] : memref<24x256xf32, #tpu.memory_space<vmem>>, vector<1x256xf32>
    %255 = vector.broadcast %253 : vector<1x256xf32> to vector<8x256xf32>
    %256 = arith.addf %252, %255 : vector<8x256xf32>
    %cst_147 = arith.constant dense<0x7F800000> : vector<8xf32>
    %257 = vector.multi_reduction <minimumf>, %256, %cst_147 [1] : vector<8x256xf32> to vector<8xf32>
    %258 = vector.shape_cast %257 : vector<8xf32> to vector<8x1xf32>
    %cst_148 = arith.constant 0.000000e+00 : f32
    %259 = vector.broadcast %cst_148 : f32 to vector<8x1xf32>
    %260 = arith.minimumf %258, %259 : vector<8x1xf32>
    %261 = vector.broadcast %260 : vector<8x1xf32> to vector<8x256xf32>
    %262 = arith.addf %252, %261 : vector<8x256xf32>
    %cst_149 = arith.constant 9.99999997E-7 : f32
    %263 = vector.broadcast %cst_149 : f32 to vector<8x256xf32>
    %264 = arith.maximumf %262, %263 : vector<8x256xf32>
    %265 = arith.mulf %264, %264 : vector<8x256xf32>
    %266 = arith.mulf %264, %265 : vector<8x256xf32>
    %267 = vector.broadcast %254 : vector<1x256xf32> to vector<8x256xf32>
    %268 = arith.mulf %266, %267 : vector<8x256xf32>
    %cst_150 = arith.constant dense<0.000000e+00> : vector<8xf32>
    %269 = vector.multi_reduction <add>, %268, %cst_150 [1] : vector<8x256xf32> to vector<8xf32>
    %270 = vector.shape_cast %269 : vector<8xf32> to vector<8x1xf32>
    %c0_151 = arith.constant 0 : index
    %c0_152 = arith.constant 0 : index
    %271 = vector.load %arg5[%c0_151, %c0_152] : memref<8x1xf32, #tpu.memory_space<vmem>>, vector<8x1xf32>
    %cst_153 = arith.constant 0.333333343 : f32
    %272 = vector.broadcast %cst_153 : f32 to vector<8x1xf32>
    %273 = math.powf %270, %272 : vector<8x1xf32>
    %274 = arith.subf %273, %260 : vector<8x1xf32>
    %275 = arith.addf %271, %274 : vector<8x1xf32>
    %c0_154 = arith.constant 0 : index
    %c0_155 = arith.constant 0 : index
    %276 = vector.load %arg5[%c0_154, %c0_155] : memref<8x1xf32, #tpu.memory_space<vmem>>, vector<8x1xf32>
    tpu.vector_store %arg5[%c0_154, %c0_155], %275 {strides = array<i32>} : memref<8x1xf32, #tpu.memory_space<vmem>>, vector<8x1xf32>,
    %c0_156 = arith.constant 0 : index
    %c0_157 = arith.constant 0 : index
    %277 = vector.load %arg1[%c0_156, %c0_157] : memref<8x256xf32, #tpu.memory_space<vmem>>, vector<8x256xf32>
    %c11 = arith.constant 11 : index
    %c0_158 = arith.constant 0 : index
    %278 = vector.load %arg3[%c11, %c0_158] : memref<24x256xf32, #tpu.memory_space<vmem>>, vector<1x256xf32>
    %c11_159 = arith.constant 11 : index
    %c0_160 = arith.constant 0 : index
    %279 = vector.load %arg2[%c11_159, %c0_160] : memref<24x256xf32, #tpu.memory_space<vmem>>, vector<1x256xf32>
    %280 = vector.broadcast %278 : vector<1x256xf32> to vector<8x256xf32>
    %281 = arith.addf %277, %280 : vector<8x256xf32>
    %cst_161 = arith.constant dense<0x7F800000> : vector<8xf32>
    %282 = vector.multi_reduction <minimumf>, %281, %cst_161 [1] : vector<8x256xf32> to vector<8xf32>
    %283 = vector.shape_cast %282 : vector<8xf32> to vector<8x1xf32>
    %cst_162 = arith.constant 0.000000e+00 : f32
    %284 = vector.broadcast %cst_162 : f32 to vector<8x1xf32>
    %285 = arith.minimumf %283, %284 : vector<8x1xf32>
    %286 = vector.broadcast %285 : vector<8x1xf32> to vector<8x256xf32>
    %287 = arith.addf %277, %286 : vector<8x256xf32>
    %cst_163 = arith.constant 9.99999997E-7 : f32
    %288 = vector.broadcast %cst_163 : f32 to vector<8x256xf32>
    %289 = arith.maximumf %287, %288 : vector<8x256xf32>
    %290 = arith.mulf %289, %289 : vector<8x256xf32>
    %291 = arith.mulf %289, %290 : vector<8x256xf32>
    %292 = vector.broadcast %279 : vector<1x256xf32> to vector<8x256xf32>
    %293 = arith.mulf %291, %292 : vector<8x256xf32>
    %cst_164 = arith.constant dense<0.000000e+00> : vector<8xf32>
    %294 = vector.multi_reduction <add>, %293, %cst_164 [1] : vector<8x256xf32> to vector<8xf32>
    %295 = vector.shape_cast %294 : vector<8xf32> to vector<8x1xf32>
    %c0_165 = arith.constant 0 : index
    %c0_166 = arith.constant 0 : index
    %296 = vector.load %arg5[%c0_165, %c0_166] : memref<8x1xf32, #tpu.memory_space<vmem>>, vector<8x1xf32>
    %cst_167 = arith.constant 0.333333343 : f32
    %297 = vector.broadcast %cst_167 : f32 to vector<8x1xf32>
    %298 = math.powf %295, %297 : vector<8x1xf32>
    %299 = arith.subf %298, %285 : vector<8x1xf32>
    %300 = arith.addf %296, %299 : vector<8x1xf32>
    %c0_168 = arith.constant 0 : index
    %c0_169 = arith.constant 0 : index
    %301 = vector.load %arg5[%c0_168, %c0_169] : memref<8x1xf32, #tpu.memory_space<vmem>>, vector<8x1xf32>
    tpu.vector_store %arg5[%c0_168, %c0_169], %300 {strides = array<i32>} : memref<8x1xf32, #tpu.memory_space<vmem>>, vector<8x1xf32>,
    %c0_170 = arith.constant 0 : index
    %c0_171 = arith.constant 0 : index
    %302 = vector.load %arg1[%c0_170, %c0_171] : memref<8x256xf32, #tpu.memory_space<vmem>>, vector<8x256xf32>
    %c12 = arith.constant 12 : index
    %c0_172 = arith.constant 0 : index
    %303 = vector.load %arg3[%c12, %c0_172] : memref<24x256xf32, #tpu.memory_space<vmem>>, vector<1x256xf32>
    %c12_173 = arith.constant 12 : index
    %c0_174 = arith.constant 0 : index
    %304 = vector.load %arg2[%c12_173, %c0_174] : memref<24x256xf32, #tpu.memory_space<vmem>>, vector<1x256xf32>
    %305 = vector.broadcast %303 : vector<1x256xf32> to vector<8x256xf32>
    %306 = arith.addf %302, %305 : vector<8x256xf32>
    %cst_175 = arith.constant dense<0x7F800000> : vector<8xf32>
    %307 = vector.multi_reduction <minimumf>, %306, %cst_175 [1] : vector<8x256xf32> to vector<8xf32>
    %308 = vector.shape_cast %307 : vector<8xf32> to vector<8x1xf32>
    %cst_176 = arith.constant 0.000000e+00 : f32
    %309 = vector.broadcast %cst_176 : f32 to vector<8x1xf32>
    %310 = arith.minimumf %308, %309 : vector<8x1xf32>
    %311 = vector.broadcast %310 : vector<8x1xf32> to vector<8x256xf32>
    %312 = arith.addf %302, %311 : vector<8x256xf32>
    %cst_177 = arith.constant 9.99999997E-7 : f32
    %313 = vector.broadcast %cst_177 : f32 to vector<8x256xf32>
    %314 = arith.maximumf %312, %313 : vector<8x256xf32>
    %315 = arith.mulf %314, %314 : vector<8x256xf32>
    %316 = arith.mulf %314, %315 : vector<8x256xf32>
    %317 = vector.broadcast %304 : vector<1x256xf32> to vector<8x256xf32>
    %318 = arith.mulf %316, %317 : vector<8x256xf32>
    %cst_178 = arith.constant dense<0.000000e+00> : vector<8xf32>
    %319 = vector.multi_reduction <add>, %318, %cst_178 [1] : vector<8x256xf32> to vector<8xf32>
    %320 = vector.shape_cast %319 : vector<8xf32> to vector<8x1xf32>
    %c0_179 = arith.constant 0 : index
    %c0_180 = arith.constant 0 : index
    %321 = vector.load %arg5[%c0_179, %c0_180] : memref<8x1xf32, #tpu.memory_space<vmem>>, vector<8x1xf32>
    %cst_181 = arith.constant 0.333333343 : f32
    %322 = vector.broadcast %cst_181 : f32 to vector<8x1xf32>
    %323 = math.powf %320, %322 : vector<8x1xf32>
    %324 = arith.subf %323, %310 : vector<8x1xf32>
    %325 = arith.addf %321, %324 : vector<8x1xf32>
    %c0_182 = arith.constant 0 : index
    %c0_183 = arith.constant 0 : index
    %326 = vector.load %arg5[%c0_182, %c0_183] : memref<8x1xf32, #tpu.memory_space<vmem>>, vector<8x1xf32>
    tpu.vector_store %arg5[%c0_182, %c0_183], %325 {strides = array<i32>} : memref<8x1xf32, #tpu.memory_space<vmem>>, vector<8x1xf32>,
    %c0_184 = arith.constant 0 : index
    %c0_185 = arith.constant 0 : index
    %327 = vector.load %arg1[%c0_184, %c0_185] : memref<8x256xf32, #tpu.memory_space<vmem>>, vector<8x256xf32>
    %c13 = arith.constant 13 : index
    %c0_186 = arith.constant 0 : index
    %328 = vector.load %arg3[%c13, %c0_186] : memref<24x256xf32, #tpu.memory_space<vmem>>, vector<1x256xf32>
    %c13_187 = arith.constant 13 : index
    %c0_188 = arith.constant 0 : index
    %329 = vector.load %arg2[%c13_187, %c0_188] : memref<24x256xf32, #tpu.memory_space<vmem>>, vector<1x256xf32>
    %330 = vector.broadcast %328 : vector<1x256xf32> to vector<8x256xf32>
    %331 = arith.addf %327, %330 : vector<8x256xf32>
    %cst_189 = arith.constant dense<0x7F800000> : vector<8xf32>
    %332 = vector.multi_reduction <minimumf>, %331, %cst_189 [1] : vector<8x256xf32> to vector<8xf32>
    %333 = vector.shape_cast %332 : vector<8xf32> to vector<8x1xf32>
    %cst_190 = arith.constant 0.000000e+00 : f32
    %334 = vector.broadcast %cst_190 : f32 to vector<8x1xf32>
    %335 = arith.minimumf %333, %334 : vector<8x1xf32>
    %336 = vector.broadcast %335 : vector<8x1xf32> to vector<8x256xf32>
    %337 = arith.addf %327, %336 : vector<8x256xf32>
    %cst_191 = arith.constant 9.99999997E-7 : f32
    %338 = vector.broadcast %cst_191 : f32 to vector<8x256xf32>
    %339 = arith.maximumf %337, %338 : vector<8x256xf32>
    %340 = arith.mulf %339, %339 : vector<8x256xf32>
    %341 = arith.mulf %339, %340 : vector<8x256xf32>
    %342 = vector.broadcast %329 : vector<1x256xf32> to vector<8x256xf32>
    %343 = arith.mulf %341, %342 : vector<8x256xf32>
    %cst_192 = arith.constant dense<0.000000e+00> : vector<8xf32>
    %344 = vector.multi_reduction <add>, %343, %cst_192 [1] : vector<8x256xf32> to vector<8xf32>
    %345 = vector.shape_cast %344 : vector<8xf32> to vector<8x1xf32>
    %c0_193 = arith.constant 0 : index
    %c0_194 = arith.constant 0 : index
    %346 = vector.load %arg5[%c0_193, %c0_194] : memref<8x1xf32, #tpu.memory_space<vmem>>, vector<8x1xf32>
    %cst_195 = arith.constant 0.333333343 : f32
    %347 = vector.broadcast %cst_195 : f32 to vector<8x1xf32>
    %348 = math.powf %345, %347 : vector<8x1xf32>
    %349 = arith.subf %348, %335 : vector<8x1xf32>
    %350 = arith.addf %346, %349 : vector<8x1xf32>
    %c0_196 = arith.constant 0 : index
    %c0_197 = arith.constant 0 : index
    %351 = vector.load %arg5[%c0_196, %c0_197] : memref<8x1xf32, #tpu.memory_space<vmem>>, vector<8x1xf32>
    tpu.vector_store %arg5[%c0_196, %c0_197], %350 {strides = array<i32>} : memref<8x1xf32, #tpu.memory_space<vmem>>, vector<8x1xf32>,
    %c0_198 = arith.constant 0 : index
    %c0_199 = arith.constant 0 : index
    %352 = vector.load %arg1[%c0_198, %c0_199] : memref<8x256xf32, #tpu.memory_space<vmem>>, vector<8x256xf32>
    %c14 = arith.constant 14 : index
    %c0_200 = arith.constant 0 : index
    %353 = vector.load %arg3[%c14, %c0_200] : memref<24x256xf32, #tpu.memory_space<vmem>>, vector<1x256xf32>
    %c14_201 = arith.constant 14 : index
    %c0_202 = arith.constant 0 : index
    %354 = vector.load %arg2[%c14_201, %c0_202] : memref<24x256xf32, #tpu.memory_space<vmem>>, vector<1x256xf32>
    %355 = vector.broadcast %353 : vector<1x256xf32> to vector<8x256xf32>
    %356 = arith.addf %352, %355 : vector<8x256xf32>
    %cst_203 = arith.constant dense<0x7F800000> : vector<8xf32>
    %357 = vector.multi_reduction <minimumf>, %356, %cst_203 [1] : vector<8x256xf32> to vector<8xf32>
    %358 = vector.shape_cast %357 : vector<8xf32> to vector<8x1xf32>
    %cst_204 = arith.constant 0.000000e+00 : f32
    %359 = vector.broadcast %cst_204 : f32 to vector<8x1xf32>
    %360 = arith.minimumf %358, %359 : vector<8x1xf32>
    %361 = vector.broadcast %360 : vector<8x1xf32> to vector<8x256xf32>
    %362 = arith.addf %352, %361 : vector<8x256xf32>
    %cst_205 = arith.constant 9.99999997E-7 : f32
    %363 = vector.broadcast %cst_205 : f32 to vector<8x256xf32>
    %364 = arith.maximumf %362, %363 : vector<8x256xf32>
    %365 = arith.mulf %364, %364 : vector<8x256xf32>
    %366 = arith.mulf %364, %365 : vector<8x256xf32>
    %367 = vector.broadcast %354 : vector<1x256xf32> to vector<8x256xf32>
    %368 = arith.mulf %366, %367 : vector<8x256xf32>
    %cst_206 = arith.constant dense<0.000000e+00> : vector<8xf32>
    %369 = vector.multi_reduction <add>, %368, %cst_206 [1] : vector<8x256xf32> to vector<8xf32>
    %370 = vector.shape_cast %369 : vector<8xf32> to vector<8x1xf32>
    %c0_207 = arith.constant 0 : index
    %c0_208 = arith.constant 0 : index
    %371 = vector.load %arg5[%c0_207, %c0_208] : memref<8x1xf32, #tpu.memory_space<vmem>>, vector<8x1xf32>
    %cst_209 = arith.constant 0.333333343 : f32
    %372 = vector.broadcast %cst_209 : f32 to vector<8x1xf32>
    %373 = math.powf %370, %372 : vector<8x1xf32>
    %374 = arith.subf %373, %360 : vector<8x1xf32>
    %375 = arith.addf %371, %374 : vector<8x1xf32>
    %c0_210 = arith.constant 0 : index
    %c0_211 = arith.constant 0 : index
    %376 = vector.load %arg5[%c0_210, %c0_211] : memref<8x1xf32, #tpu.memory_space<vmem>>, vector<8x1xf32>
    tpu.vector_store %arg5[%c0_210, %c0_211], %375 {strides = array<i32>} : memref<8x1xf32, #tpu.memory_space<vmem>>, vector<8x1xf32>,
    %c0_212 = arith.constant 0 : index
    %c0_213 = arith.constant 0 : index
    %377 = vector.load %arg1[%c0_212, %c0_213] : memref<8x256xf32, #tpu.memory_space<vmem>>, vector<8x256xf32>
    %c15 = arith.constant 15 : index
    %c0_214 = arith.constant 0 : index
    %378 = vector.load %arg3[%c15, %c0_214] : memref<24x256xf32, #tpu.memory_space<vmem>>, vector<1x256xf32>
    %c15_215 = arith.constant 15 : index
    %c0_216 = arith.constant 0 : index
    %379 = vector.load %arg2[%c15_215, %c0_216] : memref<24x256xf32, #tpu.memory_space<vmem>>, vector<1x256xf32>
    %380 = vector.broadcast %378 : vector<1x256xf32> to vector<8x256xf32>
    %381 = arith.addf %377, %380 : vector<8x256xf32>
    %cst_217 = arith.constant dense<0x7F800000> : vector<8xf32>
    %382 = vector.multi_reduction <minimumf>, %381, %cst_217 [1] : vector<8x256xf32> to vector<8xf32>
    %383 = vector.shape_cast %382 : vector<8xf32> to vector<8x1xf32>
    %cst_218 = arith.constant 0.000000e+00 : f32
    %384 = vector.broadcast %cst_218 : f32 to vector<8x1xf32>
    %385 = arith.minimumf %383, %384 : vector<8x1xf32>
    %386 = vector.broadcast %385 : vector<8x1xf32> to vector<8x256xf32>
    %387 = arith.addf %377, %386 : vector<8x256xf32>
    %cst_219 = arith.constant 9.99999997E-7 : f32
    %388 = vector.broadcast %cst_219 : f32 to vector<8x256xf32>
    %389 = arith.maximumf %387, %388 : vector<8x256xf32>
    %390 = arith.mulf %389, %389 : vector<8x256xf32>
    %391 = arith.mulf %389, %390 : vector<8x256xf32>
    %392 = vector.broadcast %379 : vector<1x256xf32> to vector<8x256xf32>
    %393 = arith.mulf %391, %392 : vector<8x256xf32>
    %cst_220 = arith.constant dense<0.000000e+00> : vector<8xf32>
    %394 = vector.multi_reduction <add>, %393, %cst_220 [1] : vector<8x256xf32> to vector<8xf32>
    %395 = vector.shape_cast %394 : vector<8xf32> to vector<8x1xf32>
    %c0_221 = arith.constant 0 : index
    %c0_222 = arith.constant 0 : index
    %396 = vector.load %arg5[%c0_221, %c0_222] : memref<8x1xf32, #tpu.memory_space<vmem>>, vector<8x1xf32>
    %cst_223 = arith.constant 0.333333343 : f32
    %397 = vector.broadcast %cst_223 : f32 to vector<8x1xf32>
    %398 = math.powf %395, %397 : vector<8x1xf32>
    %399 = arith.subf %398, %385 : vector<8x1xf32>
    %400 = arith.addf %396, %399 : vector<8x1xf32>
    %c0_224 = arith.constant 0 : index
    %c0_225 = arith.constant 0 : index
    %401 = vector.load %arg5[%c0_224, %c0_225] : memref<8x1xf32, #tpu.memory_space<vmem>>, vector<8x1xf32>
    tpu.vector_store %arg5[%c0_224, %c0_225], %400 {strides = array<i32>} : memref<8x1xf32, #tpu.memory_space<vmem>>, vector<8x1xf32>,
    %c0_226 = arith.constant 0 : index
    %c0_227 = arith.constant 0 : index
    %402 = vector.load %arg1[%c0_226, %c0_227] : memref<8x256xf32, #tpu.memory_space<vmem>>, vector<8x256xf32>
    %c16 = arith.constant 16 : index
    %c0_228 = arith.constant 0 : index
    %403 = vector.load %arg3[%c16, %c0_228] : memref<24x256xf32, #tpu.memory_space<vmem>>, vector<1x256xf32>
    %c16_229 = arith.constant 16 : index
    %c0_230 = arith.constant 0 : index
    %404 = vector.load %arg2[%c16_229, %c0_230] : memref<24x256xf32, #tpu.memory_space<vmem>>, vector<1x256xf32>
    %405 = vector.broadcast %403 : vector<1x256xf32> to vector<8x256xf32>
    %406 = arith.addf %402, %405 : vector<8x256xf32>
    %cst_231 = arith.constant dense<0x7F800000> : vector<8xf32>
    %407 = vector.multi_reduction <minimumf>, %406, %cst_231 [1] : vector<8x256xf32> to vector<8xf32>
    %408 = vector.shape_cast %407 : vector<8xf32> to vector<8x1xf32>
    %cst_232 = arith.constant 0.000000e+00 : f32
    %409 = vector.broadcast %cst_232 : f32 to vector<8x1xf32>
    %410 = arith.minimumf %408, %409 : vector<8x1xf32>
    %411 = vector.broadcast %410 : vector<8x1xf32> to vector<8x256xf32>
    %412 = arith.addf %402, %411 : vector<8x256xf32>
    %cst_233 = arith.constant 9.99999997E-7 : f32
    %413 = vector.broadcast %cst_233 : f32 to vector<8x256xf32>
    %414 = arith.maximumf %412, %413 : vector<8x256xf32>
    %415 = arith.mulf %414, %414 : vector<8x256xf32>
    %416 = arith.mulf %414, %415 : vector<8x256xf32>
    %417 = vector.broadcast %404 : vector<1x256xf32> to vector<8x256xf32>
    %418 = arith.mulf %416, %417 : vector<8x256xf32>
    %cst_234 = arith.constant dense<0.000000e+00> : vector<8xf32>
    %419 = vector.multi_reduction <add>, %418, %cst_234 [1] : vector<8x256xf32> to vector<8xf32>
    %420 = vector.shape_cast %419 : vector<8xf32> to vector<8x1xf32>
    %c0_235 = arith.constant 0 : index
    %c0_236 = arith.constant 0 : index
    %421 = vector.load %arg5[%c0_235, %c0_236] : memref<8x1xf32, #tpu.memory_space<vmem>>, vector<8x1xf32>
    %cst_237 = arith.constant 0.333333343 : f32
    %422 = vector.broadcast %cst_237 : f32 to vector<8x1xf32>
    %423 = math.powf %420, %422 : vector<8x1xf32>
    %424 = arith.subf %423, %410 : vector<8x1xf32>
    %425 = arith.addf %421, %424 : vector<8x1xf32>
    %c0_238 = arith.constant 0 : index
    %c0_239 = arith.constant 0 : index
    %426 = vector.load %arg5[%c0_238, %c0_239] : memref<8x1xf32, #tpu.memory_space<vmem>>, vector<8x1xf32>
    tpu.vector_store %arg5[%c0_238, %c0_239], %425 {strides = array<i32>} : memref<8x1xf32, #tpu.memory_space<vmem>>, vector<8x1xf32>,
    %c0_240 = arith.constant 0 : index
    %c0_241 = arith.constant 0 : index
    %427 = vector.load %arg1[%c0_240, %c0_241] : memref<8x256xf32, #tpu.memory_space<vmem>>, vector<8x256xf32>
    %c17 = arith.constant 17 : index
    %c0_242 = arith.constant 0 : index
    %428 = vector.load %arg3[%c17, %c0_242] : memref<24x256xf32, #tpu.memory_space<vmem>>, vector<1x256xf32>
    %c17_243 = arith.constant 17 : index
    %c0_244 = arith.constant 0 : index
    %429 = vector.load %arg2[%c17_243, %c0_244] : memref<24x256xf32, #tpu.memory_space<vmem>>, vector<1x256xf32>
    %430 = vector.broadcast %428 : vector<1x256xf32> to vector<8x256xf32>
    %431 = arith.addf %427, %430 : vector<8x256xf32>
    %cst_245 = arith.constant dense<0x7F800000> : vector<8xf32>
    %432 = vector.multi_reduction <minimumf>, %431, %cst_245 [1] : vector<8x256xf32> to vector<8xf32>
    %433 = vector.shape_cast %432 : vector<8xf32> to vector<8x1xf32>
    %cst_246 = arith.constant 0.000000e+00 : f32
    %434 = vector.broadcast %cst_246 : f32 to vector<8x1xf32>
    %435 = arith.minimumf %433, %434 : vector<8x1xf32>
    %436 = vector.broadcast %435 : vector<8x1xf32> to vector<8x256xf32>
    %437 = arith.addf %427, %436 : vector<8x256xf32>
    %cst_247 = arith.constant 9.99999997E-7 : f32
    %438 = vector.broadcast %cst_247 : f32 to vector<8x256xf32>
    %439 = arith.maximumf %437, %438 : vector<8x256xf32>
    %440 = arith.mulf %439, %439 : vector<8x256xf32>
    %441 = arith.mulf %439, %440 : vector<8x256xf32>
    %442 = vector.broadcast %429 : vector<1x256xf32> to vector<8x256xf32>
    %443 = arith.mulf %441, %442 : vector<8x256xf32>
    %cst_248 = arith.constant dense<0.000000e+00> : vector<8xf32>
    %444 = vector.multi_reduction <add>, %443, %cst_248 [1] : vector<8x256xf32> to vector<8xf32>
    %445 = vector.shape_cast %444 : vector<8xf32> to vector<8x1xf32>
    %c0_249 = arith.constant 0 : index
    %c0_250 = arith.constant 0 : index
    %446 = vector.load %arg5[%c0_249, %c0_250] : memref<8x1xf32, #tpu.memory_space<vmem>>, vector<8x1xf32>
    %cst_251 = arith.constant 0.333333343 : f32
    %447 = vector.broadcast %cst_251 : f32 to vector<8x1xf32>
    %448 = math.powf %445, %447 : vector<8x1xf32>
    %449 = arith.subf %448, %435 : vector<8x1xf32>
    %450 = arith.addf %446, %449 : vector<8x1xf32>
    %c0_252 = arith.constant 0 : index
    %c0_253 = arith.constant 0 : index
    %451 = vector.load %arg5[%c0_252, %c0_253] : memref<8x1xf32, #tpu.memory_space<vmem>>, vector<8x1xf32>
    tpu.vector_store %arg5[%c0_252, %c0_253], %450 {strides = array<i32>} : memref<8x1xf32, #tpu.memory_space<vmem>>, vector<8x1xf32>,
    %c0_254 = arith.constant 0 : index
    %c0_255 = arith.constant 0 : index
    %452 = vector.load %arg1[%c0_254, %c0_255] : memref<8x256xf32, #tpu.memory_space<vmem>>, vector<8x256xf32>
    %c18 = arith.constant 18 : index
    %c0_256 = arith.constant 0 : index
    %453 = vector.load %arg3[%c18, %c0_256] : memref<24x256xf32, #tpu.memory_space<vmem>>, vector<1x256xf32>
    %c18_257 = arith.constant 18 : index
    %c0_258 = arith.constant 0 : index
    %454 = vector.load %arg2[%c18_257, %c0_258] : memref<24x256xf32, #tpu.memory_space<vmem>>, vector<1x256xf32>
    %455 = vector.broadcast %453 : vector<1x256xf32> to vector<8x256xf32>
    %456 = arith.addf %452, %455 : vector<8x256xf32>
    %cst_259 = arith.constant dense<0x7F800000> : vector<8xf32>
    %457 = vector.multi_reduction <minimumf>, %456, %cst_259 [1] : vector<8x256xf32> to vector<8xf32>
    %458 = vector.shape_cast %457 : vector<8xf32> to vector<8x1xf32>
    %cst_260 = arith.constant 0.000000e+00 : f32
    %459 = vector.broadcast %cst_260 : f32 to vector<8x1xf32>
    %460 = arith.minimumf %458, %459 : vector<8x1xf32>
    %461 = vector.broadcast %460 : vector<8x1xf32> to vector<8x256xf32>
    %462 = arith.addf %452, %461 : vector<8x256xf32>
    %cst_261 = arith.constant 9.99999997E-7 : f32
    %463 = vector.broadcast %cst_261 : f32 to vector<8x256xf32>
    %464 = arith.maximumf %462, %463 : vector<8x256xf32>
    %465 = arith.mulf %464, %464 : vector<8x256xf32>
    %466 = arith.mulf %464, %465 : vector<8x256xf32>
    %467 = vector.broadcast %454 : vector<1x256xf32> to vector<8x256xf32>
    %468 = arith.mulf %466, %467 : vector<8x256xf32>
    %cst_262 = arith.constant dense<0.000000e+00> : vector<8xf32>
    %469 = vector.multi_reduction <add>, %468, %cst_262 [1] : vector<8x256xf32> to vector<8xf32>
    %470 = vector.shape_cast %469 : vector<8xf32> to vector<8x1xf32>
    %c0_263 = arith.constant 0 : index
    %c0_264 = arith.constant 0 : index
    %471 = vector.load %arg5[%c0_263, %c0_264] : memref<8x1xf32, #tpu.memory_space<vmem>>, vector<8x1xf32>
    %cst_265 = arith.constant 0.333333343 : f32
    %472 = vector.broadcast %cst_265 : f32 to vector<8x1xf32>
    %473 = math.powf %470, %472 : vector<8x1xf32>
    %474 = arith.subf %473, %460 : vector<8x1xf32>
    %475 = arith.addf %471, %474 : vector<8x1xf32>
    %c0_266 = arith.constant 0 : index
    %c0_267 = arith.constant 0 : index
    %476 = vector.load %arg5[%c0_266, %c0_267] : memref<8x1xf32, #tpu.memory_space<vmem>>, vector<8x1xf32>
    tpu.vector_store %arg5[%c0_266, %c0_267], %475 {strides = array<i32>} : memref<8x1xf32, #tpu.memory_space<vmem>>, vector<8x1xf32>,
    %c0_268 = arith.constant 0 : index
    %c0_269 = arith.constant 0 : index
    %477 = vector.load %arg5[%c0_268, %c0_269] : memref<8x1xf32, #tpu.memory_space<vmem>>, vector<8x1xf32>
    %c0_270 = arith.constant 0 : index
    %c0_271 = arith.constant 0 : index
    %478 = vector.load %arg4[%c0_270, %c0_271] : memref<8x1xf32, #tpu.memory_space<vmem>>, vector<8x1xf32>
    tpu.vector_store %arg4[%c0_270, %c0_271], %477 {strides = array<i32>} : memref<8x1xf32, #tpu.memory_space<vmem>>, vector<8x1xf32>,
    return
  }
  func.func @transform_0(%arg0: i32) -> (i32, i32) {
    %c0_i32 = arith.constant 0 : i32
    %c0_i32_0 = arith.constant 0 : i32
    return %arg0, %c0_i32 : i32, i32
  }
  func.func @transform_1(%arg0: i32) -> (i32, i32) {
    %c0_i32 = arith.constant 0 : i32
    %c0_i32_0 = arith.constant 0 : i32
    %c0_i32_1 = arith.constant 0 : i32
    return %c0_i32, %c0_i32_0 : i32, i32
  }
  func.func @transform_2(%arg0: i32) -> (i32, i32) {
    %c0_i32 = arith.constant 0 : i32
    %c0_i32_0 = arith.constant 0 : i32
    %c0_i32_1 = arith.constant 0 : i32
    return %c0_i32, %c0_i32_0 : i32, i32
  }
  func.func @transform_3(%arg0: i32) -> (i32, i32) {
    %c0_i32 = arith.constant 0 : i32
    %c0_i32_0 = arith.constant 0 : i32
    return %arg0, %c0_i32 : i32, i32
  }
}

</mosaic_0001>

<bundles_post_ra>
// kernel: tpu_custom_call.1
= control target key start
LH: loop header
LB: loop body
LE: loop exit
PB: predicated region body
PF: predicated region fallthrough
CT: control target
= control target key end

     0   :  { %8 = vsyncpa [#allocation4], 0  ;;  %s2267_s0 = inlined_call_operand.hbm [shape: f32[8,256], index: 0, kind: input, shape index: {}]   ;;  %s2268_s1 = inlined_call_operand.hbm [shape: f32[24,256], index: 1, kind: input, shape index: {}]   ;;  %s2269_s2 = inlined_call_operand.hbm [shape: f32[24,256], index: 2, kind: input, shape index: {}]   ;;  %s2270_s3 = inlined_call_operand.vmem [shape: f32[8,1], index: 3, kind: output, shape index: {}]  }
   0x1   :  { %9 = vsyncpa [#allocation6], 0  ;;  %s1543_s12 = smov [#allocation5]   ;;  %s1473_s16 = scalar_lea.hbm %s2268_s1, 768 }
   0x2   :  { %s25_s13 = sshll.u32 %s1543_s12, 4  ;;  %p1474_p0 = scmp.ne.s32.totalorder %s2268_s1, %s1473_s16  ;;  %s26_s13 = int_to_ptr.vmem [resolvable:$true] %s25_s13 }
   0x3   :  { %p1477_p1 = scmp.lt.u32.totalorder %s1473_s16, %s2268_s1 }
   0x5   :  { %p1479_p2 = pnand %p1477_p1, %p1474_p0 }
   0x7   :  { %1482 = shalt.err (!%p1479_p2)
}
   0x8   :  { %s1483_s21 = scalar_lea.vmem %s26_s13, 768  ;;  %p1488_p4 = scmp.lt.s32.totalorder %s26_s13, %s26_s13 }
   0x9   :  { %p1484_p3 = scmp.ne.s32.totalorder %s26_s13, %s1483_s21  ;;  %p1489_p5 = scmp.lt.s32.totalorder %s1483_s21, %s1483_s21 }
   0xb   :  { %p1490_p6 = por %p1489_p5, %p1488_p4 }
   0xd   :  { %p1491_p7 = pnand %p1490_p6, %p1484_p3 }
   0xf   :  { %1494 = shalt.err (!%p1491_p7)
}
  0x10   :  { %s1544_s22 = smov 256   ;;  %s1545_s23 = smov 16  }
  0x11   :  { %31 = dma.hbm_to_vmem [thread:$0]  %s2268_s1, 768, %s26_s13, [#allocation6], %s1544_s22, %s1544_s22, %s1545_s23  }
  0x12   :  { %s1546_s26 = smov [#allocation3]   ;;  %s1547_s28 = smov [#allocation7]  }
  0x13   :  { %s16_s27 = sshll.u32 %s1546_s26, 4  ;;  %s37_s29 = sshll.u32 %s1547_s28, 4  ;;  %s17_s27 = int_to_ptr.vmem [resolvable:$true] %s16_s27  ;;  %s38_s29 = int_to_ptr.vmem [resolvable:$true] %s37_s29 }
  0x14   :  { %s1495_s5 = scalar_lea.hbm %s2267_s0, 256 }
  0x15   :  { %p1496_p8 = scmp.ne.s32.totalorder %s2267_s0, %s1495_s5  ;;  %p1499_p9 = scmp.lt.u32.totalorder %s1495_s5, %s2267_s0 }
  0x17   :  { %p1501_p10 = pnand %p1499_p9, %p1496_p8 }
  0x19   :  { %1504 = shalt.err (!%p1501_p10)
}
  0x1a   :  { %s1505_s1 = scalar_lea.vmem %s17_s27, 256  ;;  %p1510_p12 = scmp.lt.s32.totalorder %s17_s27, %s17_s27 }
  0x1b   :  { %p1506_p11 = scmp.ne.s32.totalorder %s17_s27, %s1505_s1  ;;  %p1511_p13 = scmp.lt.s32.totalorder %s1505_s1, %s1505_s1 }
  0x1d   :  { %p1512_p0 = por %p1511_p13, %p1510_p12 }
  0x1f   :  { %p1513_p1 = pnand %p1512_p0, %p1506_p11 }
  0x21   :  { %1516 = shalt.err (!%p1513_p1)
}
  0x22   :  { %19 = dma.hbm_to_vmem [thread:$0]  %s2267_s0, 256, %s17_s27, [#allocation4]  }
  0x23   :  { %s1517_s14 = scalar_lea.hbm %s2269_s2, 768 }
  0x24   :  { %p1518_p2 = scmp.ne.s32.totalorder %s2269_s2, %s1517_s14  ;;  %p1521_p3 = scmp.lt.u32.totalorder %s1517_s14, %s2269_s2 }
  0x26   :  { %p1523_p4 = pnand %p1521_p3, %p1518_p2 }
  0x28   :  { %1526 = shalt.err (!%p1523_p4)
}
  0x29   :  { %s1527_s19 = scalar_lea.vmem %s38_s29, 768  ;;  %p1532_p6 = scmp.lt.s32.totalorder %s38_s29, %s38_s29 }
  0x2a   :  { %p1528_p5 = scmp.ne.s32.totalorder %s38_s29, %s1527_s19  ;;  %p1533_p7 = scmp.lt.s32.totalorder %s1527_s19, %s1527_s19 }
  0x2c   :  { %p1534_p8 = por %p1533_p7, %p1532_p6 }
  0x2e   :  { %p1535_p9 = pnand %p1534_p8, %p1528_p5 }
  0x30   :  { %1538 = shalt.err (!%p1535_p9)
}
  0x31   :  { %43 = dma.hbm_to_vmem [thread:$0]  %s2269_s2, 768, %s38_s29, [#allocation6], %s1544_s22, %s1544_s22, %s1545_s23  }
  0x32   :  { %1539 = dma.done.wait [#allocation4], 256  }
  0x33   :  { %1540 = vsyncadd [#allocation4], 4294967040 }
  0x34   :  { %1541 = dma.done.wait [#allocation6], 1536  }
  0x35   :  { %1542 = vsyncadd [#allocation6], 4294965760  ;;  %v60_v0 = vlaneseq  ;;  %v1615_v4 = vld [vmem:[#allocation3] sm:$0xff]  ;;  %v1617_v5 = vld [vmem:[#allocation3 + $0x8] sm:$0xff]  ;;  %vm53_vm0 = vcmask 7168  }
  0x36   :  { %v57_v6 = vld [vmem:[#allocation7] ss:$8 sm:$0x3]  ;;  %v108_v9 = vld [vmem:[#allocation7 + $0x1] ss:$8 sm:$0x3] }
  0x37   :  { %v61_v1 = vshrl.u32 %v60_v0, 7  ;;  %v160_v10 = vld [vmem:[#allocation7 + $0x2] ss:$8 sm:$0x3] }
  0x38   :  { %v264_v15 = vld [vmem:[#allocation7 + $0x4] ss:$8 sm:$0x3]  ;;  %v212_v16 = vld [vmem:[#allocation7 + $0x3] ss:$8 sm:$0x3] }
  0x39   :  { %v1611_v2 = vsub.s32 0, %v61_v1  ;;  %v1613_v3 = vsub.s32 1, %v61_v1  ;;  %v368_v25 = vld [vmem:[#allocation7 + $0x6] ss:$8 sm:$0x3] }
  0x3a   :  { %v316_v28 = vld [vmem:[#allocation7 + $0x5] ss:$8 sm:$0x3]  ;;  %v472_v37 = vld [vmem:[#allocation7 + $0x10] ss:$8 sm:$0x3] }
  0x3b   :  { %v63_v7 = vrot.slane %v57_v6, %v1611_v2  ;;  %v67_v8 = vrot.slane %v57_v6, %v1613_v3  ;;  %v115_v11 = vrot.slane %v108_v9, %v1611_v2  ;;  %v119_v12 = vrot.slane %v108_v9, %v1613_v3  ;;  %v420_v41 = vld [vmem:[#allocation7 + $0x7] ss:$8 sm:$0x3]  ;;  %v524_v50 = vld [vmem:[#allocation7 + $0x11] ss:$8 sm:$0x3] }
  0x3c   :  { %v167_v13 = vrot.slane %v160_v10, %v1611_v2  ;;  %v171_v14 = vrot.slane %v160_v10, %v1613_v3  ;;  %v271_v19 = vrot.slane %v264_v15, %v1611_v2  ;;  %v275_v20 = vrot.slane %v264_v15, %v1613_v3  ;;  %v576_v61 = vld [vmem:[#allocation7 + $0x12] ss:$8 sm:$0x3] }
  0x3d   :  { %v70_v17 = vadd.f32 %v63_v7, %v1615_v4  ;;  %v71_v18 = vadd.f32 %v67_v8, %v1617_v5  ;;  %v122_v21 = vadd.f32 %v115_v11, %v1615_v4  ;;  %v123_v22 = vadd.f32 %v119_v12, %v1617_v5  ;;  %v628_v8 = vld [vmem:[#allocation7 + $0x13] ss:$8 sm:$0x3] }
  0x3e   :  { %v174_v23 = vadd.f32 %v167_v13, %v1615_v4  ;;  %v175_v24 = vadd.f32 %v171_v14, %v1617_v5  ;;  %v219_v27 = vrot.slane %v212_v16, %v1611_v2  ;;  %v278_v30 = vadd.f32 %v271_v19, %v1615_v4  ;;  %v680_v14 = vld [vmem:[#allocation7 + $0x14] ss:$8 sm:$0x3] }
  0x3f   :  { %v72_v26 = vmin.f32 %v70_v17, %v71_v18  ;;  %v279_v31 = vadd.f32 %v275_v20, %v1617_v5  ;;  %v223_v32 = vrot.slane %v212_v16, %v1613_v3  ;;  %v124_v33 = vmin.f32 %v122_v21, %v123_v22  ;;  %v732_v20 = vld [vmem:[#allocation7 + $0x15] ss:$8 sm:$0x3] }
  0x40   :  { %v176_v29 = vmin.f32 %v174_v23, %v175_v24  ;;  %v226_v34 = vadd.f32 %v219_v27, %v1615_v4  ;;  %v375_v35 = vrot.slane %v368_v25, %v1611_v2  ;;  %v379_v36 = vrot.slane %v368_v25, %v1613_v3 }
  0x41   :  { %73 = vmin.xlane.f32.xlu0 %v72_v26  ;;  %v227_v38 = vadd.f32 %v223_v32, %v1617_v5  ;;  %v323_v39 = vrot.slane %v316_v28, %v1611_v2  ;;  %v327_v40 = vrot.slane %v316_v28, %v1613_v3  ;;  %v280_v42 = vmin.f32 %v278_v30, %v279_v31  ;;  %v784_v26 = vld [vmem:[#allocation7 + $0x16] ss:$8 sm:$0x3]  ;;  %v836_v32 = vld [vmem:[#allocation7 + $0x17] ss:$8 sm:$0x3] }
  0x42   :  { %177 = vmin.xlane.f32.xlu1 %v176_v29  ;;  %v479_v44 = vrot.slane %v472_v37, %v1611_v2  ;;  %v382_v46 = vadd.f32 %v375_v35, %v1615_v4  ;;  %v383_v47 = vadd.f32 %v379_v36, %v1617_v5  ;;  %v483_v48 = vrot.slane %v472_v37, %v1613_v3 }
  0x43   :  { %v228_v43 = vmin.f32 %v226_v34, %v227_v38  ;;  %v330_v45 = vadd.f32 %v323_v39, %v1615_v4  ;;  %v331_v49 = vadd.f32 %v327_v40, %v1617_v5  ;;  %v427_v51 = vrot.slane %v420_v41, %v1611_v2  ;;  %v888_v38 = vld [vmem:[#allocation7 + $0x20] ss:$8 sm:$0x3] }
  0x44   :  { %v431_v53 = vrot.slane %v420_v41, %v1613_v3  ;;  %v486_v54 = vadd.f32 %v479_v44, %v1615_v4  ;;  %v531_v55 = vrot.slane %v524_v50, %v1611_v2  ;;  %v384_v57 = vmin.f32 %v382_v46, %v383_v47  ;;  %v940_v44 = vld [vmem:[#allocation7 + $0x21] ss:$8 sm:$0x3] }
  0x45   :  { %125 = vmin.xlane.f32.xlu0 %v124_v33  ;;  %v332_v52 = vmin.f32 %v330_v45, %v331_v49  ;;  %v434_v56 = vadd.f32 %v427_v51, %v1615_v4  ;;  %v487_v58 = vadd.f32 %v483_v48, %v1617_v5  ;;  %v535_v59 = vrot.slane %v524_v50, %v1613_v3  ;;  %v992_v50 = vld [vmem:[#allocation7 + $0x22] ss:$8 sm:$0x3] }
  0x46   :  { %229 = vmin.xlane.f32.xlu1 %v228_v43  ;;  %v435_v60 = vadd.f32 %v431_v53, %v1617_v5  ;;  %v538_v63 = vadd.f32 %v531_v55, %v1615_v4  ;;  %v583_v6 = vrot.slane %v576_v61, %v1611_v2  ;;  %v587_v7 = vrot.slane %v576_v61, %v1613_v3  ;;  %v1696_v61 = vld [vmem:[#allocation5] ss:$8 sm:$0x3] }
  0x47   :  { %v488_v0 = vmin.f32 %v486_v54, %v487_v58  ;;  %v539_v1 = vadd.f32 %v535_v59, %v1617_v5  ;;  %v635_v9 = vrot.slane %v628_v8, %v1611_v2  ;;  %v639_v13 = vrot.slane %v628_v8, %v1613_v3 }
  0x48   :  { %v436_v62 = vmin.f32 %v434_v56, %v435_v60  ;;  %v590_v11 = vadd.f32 %v583_v6, %v1615_v4  ;;  %v591_v12 = vadd.f32 %v587_v7, %v1617_v5  ;;  %v687_v18 = vrot.slane %v680_v14, %v1611_v2  ;;  %v1706_v6 = vld [vmem:[#allocation5 + $0x5] ss:$8 sm:$0x3] }
  0x49   :  { %281 = vmin.xlane.f32.xlu0 %v280_v42  ;;  %v540_v10 = vmin.f32 %v538_v63, %v539_v1  ;;  %v642_v15 = vadd.f32 %v635_v9, %v1615_v4  ;;  %v643_v17 = vadd.f32 %v639_v13, %v1617_v5  ;;  %v691_v19 = vrot.slane %v680_v14, %v1613_v3  ;;  %v1700_v63 = vld [vmem:[#allocation5 + $0x2] ss:$8 sm:$0x3]  ;;  %v1704_v1 = vld [vmem:[#allocation5 + $0x4] ss:$8 sm:$0x3] }
  0x4a   :  { %333 = vmin.xlane.f32.xlu1 %v332_v52  ;;  %v592_v16 = vmin.f32 %v590_v11, %v591_v12  ;;  %v739_v21 = vrot.slane %v732_v20, %v1611_v2  ;;  %v694_v23 = vadd.f32 %v687_v18, %v1615_v4  ;;  %v743_v25 = vrot.slane %v732_v20, %v1613_v3  ;;  %v1716_v11 = vld [vmem:[#allocation5 + $0x6] ss:$8 sm:$0x3]  ;;  %v1718_v12 = vld [vmem:[#allocation5 + $0x7] ss:$8 sm:$0x3] }
  0x4b   :  { %v644_v22 = vmin.f32 %v642_v15, %v643_v17  ;;  %v695_v24 = vadd.f32 %v691_v19, %v1617_v5  ;;  %v791_v27 = vrot.slane %v784_v26, %v1611_v2  ;;  %v795_v31 = vrot.slane %v784_v26, %v1613_v3  ;;  %v1728_v17 = vld [vmem:[#allocation5 + $0x13] ss:$8 sm:$0x3] }
  0x4c   :  { %v746_v29 = vadd.f32 %v739_v21, %v1615_v4  ;;  %v747_v30 = vadd.f32 %v743_v25, %v1617_v5  ;;  %v843_v36 = vrot.slane %v836_v32, %v1611_v2  ;;  %v847_v37 = vrot.slane %v836_v32, %v1613_v3 }
  0x4d   :  { %385 = vmin.xlane.f32.xlu0 %v384_v57  ;;  %v696_v28 = vmin.f32 %v694_v23, %v695_v24  ;;  %v798_v33 = vadd.f32 %v791_v27, %v1615_v4  ;;  %v799_v35 = vadd.f32 %v795_v31, %v1617_v5  ;;  %v895_v39 = vrot.slane %v888_v38, %v1611_v2  ;;  %v1738_v23 = vld [vmem:[#allocation5 + $0x10] ss:$8 sm:$0x3] }
  0x4e   :  { %437 = vmin.xlane.f32.xlu1 %v436_v62  ;;  %v748_v34 = vmin.f32 %v746_v29, %v747_v30  ;;  %v850_v41 = vadd.f32 %v843_v36, %v1615_v4  ;;  %v851_v42 = vadd.f32 %v847_v37, %v1617_v5  ;;  %v899_v43 = vrot.slane %v888_v38, %v1613_v3  ;;  %v1698_v62 = vld [vmem:[#allocation5 + $0x1] ss:$8 sm:$0x3]  ;;  %v1748_v29 = vld [vmem:[#allocation5 + $0x11] ss:$8 sm:$0x3] }
  0x4f   :  { %v800_v40 = vmin.f32 %v798_v33, %v799_v35  ;;  %v947_v45 = vrot.slane %v940_v44, %v1611_v2  ;;  %v902_v47 = vadd.f32 %v895_v39, %v1615_v4  ;;  %v951_v49 = vrot.slane %v940_v44, %v1613_v3  ;;  %v1776_v44 = vld [vmem:[#allocation5 + $0x12] ss:$8 sm:$0x3] }
  0x50   :  { %v852_v46 = vmin.f32 %v850_v41, %v851_v42  ;;  %v903_v48 = vadd.f32 %v899_v43, %v1617_v5  ;;  %v999_v51 = vrot.slane %v992_v50, %v1611_v2  ;;  %v1003_v55 = vrot.slane %v992_v50, %v1613_v3  ;;  %v1802_v42 = vld [vmem:[#allocation5 + $0x14] ss:$8 sm:$0x3] }
  0x51   :  { %489 = vmin.xlane.f32.xlu0 %v488_v0  ;;  %v954_v53 = vadd.f32 %v947_v45, %v1615_v4  ;;  %v955_v54 = vadd.f32 %v951_v49, %v1617_v5  ;;  %v1548_v60 = vmov 0.0   ;;  %v1702_v0 = vld [vmem:[#allocation5 + $0x3] ss:$8 sm:$0x3]  ;;  %v88_v7 = vrot.slane %v1696_v61, %v1611_v2 }
  0x52   :  { %v904_v52 = vmin.f32 %v902_v47, %v903_v48  ;;  %v1006_v57 = vadd.f32 %v999_v51, %v1615_v4  ;;  %v1007_v58 = vadd.f32 %v1003_v55, %v1617_v5  ;;  %54 = vst.msk [vmem:[#allocation2] sm:$0xff] %vm53_vm0, %v1548_v60  ;;  %v92_v8 = vrot.slane %v1696_v61, %v1613_v3 }
  0x53   :  { %v956_v56 = vmin.f32 %v954_v53, %v955_v54  ;;  %v140_v9 = vrot.slane %v1698_v62, %v1611_v2  ;;  %v192_v13 = vrot.slane %v1700_v63, %v1611_v2  ;;  %v196_v14 = vrot.slane %v1700_v63, %v1613_v3 }
  0x54   :  { %v1008_v59 = vmin.f32 %v1006_v57, %v1007_v58  ;;  %v244_v15 = vrot.slane %v1702_v0, %v1611_v2  ;;  %v296_v19 = vrot.slane %v1704_v1, %v1611_v2  ;;  %v300_v20 = vrot.slane %v1704_v1, %v1613_v3 }
  0x55   :  { %541 = vmin.xlane.f32.xlu0 %v540_v10  ;;  %v144_v10 = vrot.slane %v1698_v62, %v1613_v3  ;;  %v348_v21 = vrot.slane %v1706_v6, %v1611_v2  ;;  %v400_v26 = vrot.slane %v1716_v11, %v1611_v2  ;;  %v404_v27 = vrot.slane %v1716_v11, %v1613_v3 }
  0x56   :  { %v456_v31 = vrot.slane %v1718_v12, %v1613_v3  ;;  %v712_v33 = vrot.slane %v1802_v42, %v1611_v2 }
  0x59   :  { %593 = vmin.xlane.f32.xlu0 %v592_v16  ;;  %v248_v16 = vrot.slane %v1702_v0, %v1613_v3 }
  0x5d   :  { %645 = vmin.xlane.f32.xlu0 %v644_v22  ;;  %v352_v22 = vrot.slane %v1706_v6, %v1613_v3 }
  0x61   :  { %697 = vmin.xlane.f32.xlu0 %v696_v28  ;;  %v452_v28 = vrot.slane %v1718_v12, %v1611_v2 }
  0x65   :  { %749 = vmin.xlane.f32.xlu0 %v748_v34  ;;  %v1758_v34 = vld [vmem:[#allocation5 + $0x15] ss:$8 sm:$0x3] }
  0x69   :  { %801 = vmin.xlane.f32.xlu0 %v800_v40 }
  0x6d   :  { %853 = vmin.xlane.f32.xlu0 %v852_v46 }
  0x71   :  { %905 = vmin.xlane.f32.xlu0 %v904_v52 }
  0x75   :  { %957 = vmin.xlane.f32.xlu0 %v956_v56 }
  0x79   :  { %1009 = vmin.xlane.f32.xlu0 %v1008_v59 }
  0xce   :  { %v74_v18 = vpop.xlane.xlu0 %73 }
  0xcf   :  { %v1740_v24 = vmin.f32 %v74_v18, 0.0  ;;  %v178_v25 = vpop.xlane.xlu1 %177 }
  0xd0   :  { %v1750_v30 = vmin.f32 %v178_v25, 0.0 }
  0xd1   :  { %v76_v35 = vadd.f32 %v1740_v24, %v1615_v4  ;;  %v77_v36 = vadd.f32 %v1740_v24, %v1617_v5 }
  0xd2   :  { %v126_v39 = vpop.xlane.xlu0 %125  ;;  %v180_v40 = vadd.f32 %v1750_v30, %v1615_v4  ;;  %v181_v41 = vadd.f32 %v1750_v30, %v1617_v5 }
  0xd3   :  { %v78_v45 = vmax.f32 %v76_v35, 1e-06  ;;  %v79_v46 = vmax.f32 %v77_v36, 1e-06  ;;  %v1778_v47 = vmin.f32 %v126_v39, 0.0  ;;  %v230_v48 = vpop.xlane.xlu1 %229 }
  0xd4   :  { %v182_v50 = vmax.f32 %v180_v40, 1e-06  ;;  %v183_v51 = vmax.f32 %v181_v41, 1e-06  ;;  %v1782_v52 = vmin.f32 %v230_v48, 0.0 }
  0xd5   :  { %v128_v54 = vadd.f32 %v1778_v47, %v1615_v4  ;;  %v129_v55 = vadd.f32 %v1778_v47, %v1617_v5  ;;  %v80_v56 = vmul.f32 %v78_v45, %v78_v45  ;;  %v81_v57 = vmul.f32 %v79_v46, %v79_v46 }
  0xd6   :  { %v282_v58 = vpop.xlane.xlu0 %281  ;;  %v232_v59 = vadd.f32 %v1782_v52, %v1615_v4  ;;  %v233_v60 = vadd.f32 %v1782_v52, %v1617_v5  ;;  %v184_v49 = vmul.f32 %v182_v50, %v182_v50  ;;  %v185_v43 = vmul.f32 %v183_v51, %v183_v51 }
  0xd7   :  { %v130_v35 = vmax.f32 %v128_v54, 1e-06  ;;  %v131_v36 = vmax.f32 %v129_v55, 1e-06  ;;  %v1798_v39 = vmin.f32 %v282_v58, 0.0  ;;  %v82_v40 = vmul.f32 %v80_v56, %v78_v45  ;;  %v334_v41 = vpop.xlane.xlu1 %333 }
  0xd8   :  { %v83_v48 = vmul.f32 %v81_v57, %v79_v46  ;;  %v1800_v53 = vmin.f32 %v334_v41, 0.0  ;;  %v234_v45 = vmax.f32 %v232_v59, 1e-06  ;;  %v235_v56 = vmax.f32 %v233_v60, 1e-06 }
  0xd9   :  { %v284_v38 = vadd.f32 %v1798_v39, %v1615_v4  ;;  %v285_v18 = vadd.f32 %v1798_v39, %v1617_v5  ;;  %v95_v54 = vmul.f32 %v88_v7, %v82_v40  ;;  %v132_v55 = vmul.f32 %v130_v35, %v130_v35 }
  0xda   :  { %v386_v46 = vpop.xlane.xlu0 %385  ;;  %v96_v57 = vmul.f32 %v92_v8, %v83_v48  ;;  %v133_v58 = vmul.f32 %v131_v36, %v131_v36  ;;  %v336_v59 = vadd.f32 %v1800_v53, %v1615_v4  ;;  %v337_v60 = vadd.f32 %v1800_v53, %v1617_v5 }
  0xdb   :  { %v1814_v41 = vmin.f32 %v386_v46, 0.0  ;;  %v134_v25 = vmul.f32 %v132_v55, %v130_v35  ;;  %v286_v61 = vmax.f32 %v284_v38, 1e-06  ;;  %v287_v8 = vmax.f32 %v285_v18, 1e-06 }
  0xdc   :  { %v97_v32 = vadd.f32 %v96_v57, %v95_v54  ;;  %v135_v7 = vmul.f32 %v133_v58, %v131_v36  ;;  %v186_v40 = vmul.f32 %v184_v49, %v182_v50  ;;  %v187_v36 = vmul.f32 %v185_v43, %v183_v51  ;;  %v438_v57 = vpop.xlane.xlu1 %437 }
  0xdd   :  { %v147_v35 = vmul.f32 %v140_v9, %v134_v25  ;;  %v236_v55 = vmul.f32 %v234_v45, %v234_v45  ;;  %v237_v46 = vmul.f32 %v235_v56, %v235_v56  ;;  %v388_v58 = vadd.f32 %v1814_v41, %v1615_v4 }
  0xde   :  { %98 = vadd.xlane.f32.xlu1 %v97_v32  ;;  %v490_v48 = vpop.xlane.xlu0 %489  ;;  %v148_v54 = vmul.f32 %v144_v10, %v135_v7  ;;  %v389_v38 = vadd.f32 %v1814_v41, %v1617_v5  ;;  %v199_v9 = vmul.f32 %v192_v13, %v186_v40  ;;  %v200_v62 = vmul.f32 %v196_v14, %v187_v36 }
  0xdf   :  { %v1834_v18 = vmin.f32 %v490_v48, 0.0  ;;  %v238_v10 = vmul.f32 %v236_v55, %v234_v45  ;;  %v239_v43 = vmul.f32 %v237_v46, %v235_v56  ;;  %v338_v49 = vmax.f32 %v336_v59, 1e-06 }
  0xe0   :  { %v149_v32 = vadd.f32 %v148_v54, %v147_v35  ;;  %v339_v50 = vmax.f32 %v337_v60, 1e-06  ;;  %v1842_v51 = vmin.f32 %v438_v57, 0.0  ;;  %v288_v25 = vmul.f32 %v286_v61, %v286_v61 }
  0xe1   :  { %v201_v48 = vadd.f32 %v200_v62, %v199_v9  ;;  %v251_v37 = vmul.f32 %v244_v15, %v238_v10  ;;  %v252_v13 = vmul.f32 %v248_v16, %v239_v43  ;;  %v289_v63 = vmul.f32 %v287_v8, %v287_v8 }
  0xe2   :  { %150 = vadd.xlane.f32.xlu1 %v149_v32  ;;  %v542_v7 = vpop.xlane.xlu0 %541  ;;  %v390_v14 = vmax.f32 %v388_v58, 1e-06  ;;  %v492_v45 = vadd.f32 %v1834_v18, %v1615_v4  ;;  %v440_v59 = vadd.f32 %v1842_v51, %v1615_v4  ;;  %v391_v60 = vmax.f32 %v389_v38, 1e-06 }
  0xe3   :  { %v1852_v56 = vmin.f32 %v542_v7, 0.0  ;;  %v441_v35 = vadd.f32 %v1842_v51, %v1617_v5  ;;  %v290_v40 = vmul.f32 %v288_v25, %v286_v61  ;;  %v291_v15 = vmul.f32 %v289_v63, %v287_v8 }
  0xe4   :  { %v493_v0 = vadd.f32 %v1834_v18, %v1617_v5  ;;  %v253_v16 = vadd.f32 %v252_v13, %v251_v37  ;;  %v442_v54 = vmax.f32 %v440_v59, 1e-06  ;;  %v340_v36 = vmul.f32 %v338_v49, %v338_v49 }
  0xe5   :  { %v443_v46 = vmax.f32 %v441_v35, 1e-06  ;;  %v303_v57 = vmul.f32 %v296_v19, %v290_v40  ;;  %v304_v58 = vmul.f32 %v300_v20, %v291_v15  ;;  %v341_v38 = vmul.f32 %v339_v50, %v339_v50 }
  0xe6   :  { %202 = vadd.xlane.f32.xlu1 %v201_v48  ;;  %v594_v55 = vpop.xlane.xlu0 %593  ;;  %v494_v61 = vmax.f32 %v492_v45, 1e-06  ;;  %v544_v8 = vadd.f32 %v1852_v56, %v1615_v4  ;;  %v545_v37 = vadd.f32 %v1852_v56, %v1617_v5  ;;  %v342_v9 = vmul.f32 %v340_v36, %v338_v49 }
  0xe7   :  { %v1870_v32 = vmin.f32 %v594_v55, 0.0  ;;  %v343_v62 = vmul.f32 %v341_v38, %v339_v50  ;;  %v392_v10 = vmul.f32 %v390_v14, %v390_v14  ;;  %v393_v43 = vmul.f32 %v391_v60, %v391_v60 }
  0xe8   :  { %v495_v25 = vmax.f32 %v493_v0, 1e-06  ;;  %v305_v19 = vadd.f32 %v304_v58, %v303_v57  ;;  %v355_v1 = vmul.f32 %v348_v21, %v342_v9  ;;  %v444_v20 = vmul.f32 %v442_v54, %v442_v54 }
  0xe9   :  { %v356_v48 = vmul.f32 %v352_v22, %v343_v62  ;;  %v394_v13 = vmul.f32 %v392_v10, %v390_v14  ;;  %v395_v49 = vmul.f32 %v393_v43, %v391_v60  ;;  %v445_v63 = vmul.f32 %v443_v46, %v443_v46 }
  0xea   :  { %254 = vadd.xlane.f32.xlu1 %v253_v16  ;;  %v646_v7 = vpop.xlane.xlu0 %645  ;;  %v546_v45 = vmax.f32 %v544_v8, 1e-06  ;;  %v547_v50 = vmax.f32 %v545_v37, 1e-06  ;;  %v446_v35 = vmul.f32 %v444_v20, %v442_v54  ;;  %v596_v40 = vadd.f32 %v1870_v32, %v1615_v4 }
  0xeb   :  { %v1878_v59 = vmin.f32 %v646_v7, 0.0  ;;  %v597_v21 = vadd.f32 %v1870_v32, %v1617_v5  ;;  %v357_v15 = vadd.f32 %v356_v48, %v355_v1  ;;  %v447_v0 = vmul.f32 %v445_v63, %v443_v46  ;;  %v1891_v16 = vld [vmem:[#allocation5 + $0x17] ss:$8 sm:$0x3] }
  0xec   :  { %v407_v14 = vmul.f32 %v400_v26, %v394_v13  ;;  %v496_v60 = vmul.f32 %v494_v61, %v494_v61  ;;  %v408_v36 = vmul.f32 %v404_v27, %v395_v49  ;;  %v459_v55 = vmul.f32 %v452_v28, %v446_v35 }
  0xed   :  { %v648_v6 = vadd.f32 %v1878_v59, %v1615_v4  ;;  %v649_v22 = vadd.f32 %v1878_v59, %v1617_v5  ;;  %v460_v46 = vmul.f32 %v456_v31, %v447_v0  ;;  %v497_v57 = vmul.f32 %v495_v25, %v495_v25 }
  0xee   :  { %306 = vadd.xlane.f32.xlu1 %v305_v19  ;;  %v698_v54 = vpop.xlane.xlu0 %697  ;;  %v548_v8 = vmul.f32 %v546_v45, %v546_v45  ;;  %v598_v37 = vmax.f32 %v596_v40, 1e-06  ;;  %v549_v9 = vmul.f32 %v547_v50, %v547_v50  ;;  %v868_v11 = vrot.slane %v1891_v16, %v1611_v2 }
  0xef   :  { %v650_v58 = vmax.f32 %v648_v6, 1e-06  ;;  %v651_v26 = vmax.f32 %v649_v22, 1e-06  ;;  %v1902_v38 = vmin.f32 %v698_v54, 0.0  ;;  %v872_v27 = vrot.slane %v1891_v16, %v1613_v3 }
  0xf0   :  { %v498_v31 = vmul.f32 %v496_v60, %v494_v61  ;;  %v599_v10 = vmax.f32 %v597_v21, 1e-06  ;;  %v409_v1 = vadd.f32 %v408_v36, %v407_v14  ;;  %v499_v20 = vmul.f32 %v497_v57, %v495_v25 }
  0xf1   :  { %v700_v28 = vadd.f32 %v1902_v38, %v1615_v4  ;;  %v652_v62 = vmul.f32 %v650_v58, %v650_v58  ;;  %v653_v12 = vmul.f32 %v651_v26, %v651_v26  ;;  %v701_v43 = vadd.f32 %v1902_v38, %v1617_v5 }
  0xf2   :  { %358 = vadd.xlane.f32.xlu1 %v357_v15  ;;  %v750_v19 = vpop.xlane.xlu0 %749  ;;  %v461_v48 = vadd.f32 %v460_v46, %v459_v55  ;;  %v550_v49 = vmul.f32 %v548_v8, %v546_v45  ;;  %v551_v40 = vmul.f32 %v549_v9, %v547_v50  ;;  %v600_v0 = vmul.f32 %v598_v37, %v598_v37 }
  0xf3   :  { %v1912_v7 = vmin.f32 %v750_v19, 0.0  ;;  %v654_v13 = vmul.f32 %v652_v62, %v650_v58  ;;  %v702_v63 = vmax.f32 %v700_v28, 1e-06  ;;  %v655_v35 = vmul.f32 %v653_v12, %v651_v26 }
  0xf4   :  { %v2271_v15 = vrot.slane %v1728_v17, %v1611_v2  ;;  %v2272_v25 = vrot.slane %v1738_v23, %v1611_v2  ;;  %v703_v14 = vmax.f32 %v701_v43, 1e-06  ;;  %v2273_v50 = vrot.slane %v1728_v17, %v1613_v3 }
  0xf5   :  { %v752_v61 = vadd.f32 %v1912_v7, %v1615_v4  ;;  %v753_v21 = vadd.f32 %v1912_v7, %v1617_v5  ;;  %v2274_v54 = vrot.slane %v1738_v23, %v1613_v3  ;;  %v601_v55 = vmul.f32 %v599_v10, %v599_v10 }
  0xf6   :  { %v667_v6 = vmul.f32 %v2271_v15, %v654_v13  ;;  %v511_v22 = vmul.f32 %v2272_v25, %v498_v31  ;;  %410 = vadd.xlane.f32.xlu1 %v409_v1  ;;  %v802_v45 = vpop.xlane.xlu0 %801  ;;  %v668_v60 = vmul.f32 %v2273_v50, %v655_v35  ;;  %v2275_v26 = vrot.slane %v1748_v29, %v1611_v2  ;;  %v786_v25 = vld [vmem:[#allocation5 + $0x16] ss:$8 sm:$0x3] }
  0xf7   :  { %v512_v36 = vmul.f32 %v2274_v54, %v499_v20  ;;  %v754_v46 = vmax.f32 %v752_v61, 1e-06  ;;  %v755_v57 = vmax.f32 %v753_v21, 1e-06  ;;  %v1930_v58 = vmin.f32 %v802_v45, 0.0 }
  0xf8   :  { %v563_v8 = vmul.f32 %v2275_v26, %v550_v49  ;;  %v669_v9 = vadd.f32 %v668_v60, %v667_v6  ;;  %v2276_v28 = vrot.slane %v1748_v29, %v1613_v3  ;;  %v602_v17 = vmul.f32 %v600_v0, %v598_v37 }
  0xf9   :  { %v704_v12 = vmul.f32 %v702_v63, %v702_v63  ;;  %v804_v23 = vadd.f32 %v1930_v58, %v1615_v4  ;;  %v805_v31 = vadd.f32 %v1930_v58, %v1617_v5  ;;  %v756_v43 = vmul.f32 %v754_v46, %v754_v46 }
  0xfa   :  { %v564_v62 = vmul.f32 %v2276_v28, %v551_v40  ;;  %v757_v19 = vmul.f32 %v755_v57, %v755_v57  ;;  %462 = vadd.xlane.f32.xlu1 %v461_v48  ;;  %670 = vadd.xlane.f32.xlu0 %v669_v9  ;;  %v854_v1 = vpop.xlane.xlu0 %853  ;;  %v513_v20 = vadd.f32 %v512_v36, %v511_v22 }
  0xfb   :  { %v603_v13 = vmul.f32 %v601_v55, %v599_v10  ;;  %v705_v49 = vmul.f32 %v703_v14, %v703_v14  ;;  %v806_v35 = vmax.f32 %v804_v23, 1e-06  ;;  %v807_v61 = vmax.f32 %v805_v31, 1e-06 }
  0xfc   :  { %v1942_v29 = vmin.f32 %v854_v1, 0.0  ;;  %v758_v37 = vmul.f32 %v756_v43, %v754_v46  ;;  %v565_v40 = vadd.f32 %v564_v62, %v563_v8  ;;  %v759_v0 = vmul.f32 %v757_v19, %v755_v57  ;;  %v890_v43 = vld [vmem:[#allocation5 + $0x20] ss:$8 sm:$0x3] }
  0xfd   :  { %v2277_v21 = vrot.slane %v1776_v44, %v1611_v2  ;;  %v706_v6 = vmul.f32 %v704_v12, %v702_v63  ;;  %v2278_v22 = vrot.slane %v1758_v34, %v1611_v2  ;;  %v808_v50 = vmul.f32 %v806_v35, %v806_v35 }
  0xfe   :  { %v856_v48 = vadd.f32 %v1942_v29, %v1615_v4  ;;  %v857_v10 = vadd.f32 %v1942_v29, %v1617_v5  ;;  %514 = vadd.xlane.f32.xlu1 %v513_v20  ;;  %v906_v60 = vpop.xlane.xlu0 %905  ;;  %v2279_v54 = vrot.slane %v1758_v34, %v1613_v3  ;;  %v2280_v63 = vrot.slane %v1776_v44, %v1613_v3 }
  0xff   :  { %v615_v15 = vmul.f32 %v2277_v21, %v602_v17  ;;  %v771_v45 = vmul.f32 %v2278_v22, %v758_v37  ;;  %v707_v46 = vmul.f32 %v705_v49, %v703_v14  ;;  %v809_v57 = vmul.f32 %v807_v61, %v807_v61 }
 0x100   :  { %v772_v36 = vmul.f32 %v2279_v54, %v759_v0  ;;  %v616_v55 = vmul.f32 %v2280_v63, %v603_v13  ;;  %v858_v26 = vmax.f32 %v856_v48, 1e-06  ;;  %v859_v8 = vmax.f32 %v857_v10, 1e-06 }
 0x101   :  { %v1960_v9 = vmin.f32 %v906_v60, 0.0  ;;  %v816_v28 = vrot.slane %v786_v25, %v1611_v2  ;;  %v810_v17 = vmul.f32 %v808_v50, %v806_v35  ;;  %v811_v12 = vmul.f32 %v809_v57, %v807_v61  ;;  %v942_v10 = vld [vmem:[#allocation5 + $0x21] ss:$8 sm:$0x3] }
 0x102   :  { %v773_v62 = vadd.f32 %v772_v36, %v771_v45  ;;  %v820_v23 = vrot.slane %v786_v25, %v1613_v3  ;;  %v860_v31 = vmul.f32 %v858_v26, %v858_v26  ;;  %v861_v14 = vmul.f32 %v859_v8, %v859_v8  ;;  %566 = vadd.xlane.f32.xlu1 %v565_v40  ;;  %v958_v19 = vpop.xlane.xlu0 %957 }
 0x103   :  { %v908_v34 = vadd.f32 %v1960_v9, %v1615_v4  ;;  %v909_v44 = vadd.f32 %v1960_v9, %v1617_v5  ;;  %v617_v1 = vadd.f32 %v616_v55, %v615_v15  ;;  %v719_v20 = vmul.f32 %v712_v33, %v706_v6 }
 0x104   :  { %774 = vadd.xlane.f32.xlu0 %v773_v62  ;;  %v2281_v13 = vrot.slane %v1802_v42, %v1613_v3  ;;  %v1974_v37 = vmin.f32 %v958_v19, 0.0  ;;  %v862_v0 = vmul.f32 %v860_v31, %v858_v26  ;;  %v863_v21 = vmul.f32 %v861_v14, %v859_v8 }
 0x105   :  { %v910_v35 = vmax.f32 %v908_v34, 1e-06  ;;  %v911_v61 = vmax.f32 %v909_v44, 1e-06  ;;  %v823_v25 = vmul.f32 %v816_v28, %v810_v17  ;;  %v824_v48 = vmul.f32 %v820_v23, %v811_v12 }
 0x106   :  { %v720_v49 = vmul.f32 %v2281_v13, %v707_v46  ;;  %v920_v40 = vrot.slane %v890_v43, %v1611_v2  ;;  %v960_v15 = vadd.f32 %v1974_v37, %v1615_v4  ;;  %v961_v33 = vadd.f32 %v1974_v37, %v1617_v5  ;;  %618 = vadd.xlane.f32.xlu1 %v617_v1  ;;  %v1010_v22 = vpop.xlane.xlu0 %1009  ;;  %v994_v17 = vld [vmem:[#allocation5 + $0x22] ss:$8 sm:$0x3] }
 0x107   :  { %v875_v42 = vmul.f32 %v868_v11, %v862_v0  ;;  %v912_v6 = vmul.f32 %v910_v35, %v910_v35  ;;  %v876_v50 = vmul.f32 %v872_v27, %v863_v21  ;;  %v913_v60 = vmul.f32 %v911_v61, %v911_v61 }
 0x108   :  { %v721_v45 = vadd.f32 %v720_v49, %v719_v20  ;;  %v924_v54 = vrot.slane %v890_v43, %v1613_v3  ;;  %v962_v36 = vmax.f32 %v960_v15, 1e-06  ;;  %v963_v63 = vmax.f32 %v961_v33, 1e-06 }
 0x109   :  { %v1988_v55 = vmin.f32 %v1010_v22, 0.0  ;;  %v914_v46 = vmul.f32 %v912_v6, %v910_v35  ;;  %v877_v57 = vadd.f32 %v876_v50, %v875_v42  ;;  %v915_v26 = vmul.f32 %v913_v60, %v911_v61 }
 0x10a   :  { %v972_v11 = vrot.slane %v942_v10, %v1611_v2  ;;  %v976_v8 = vrot.slane %v942_v10, %v1613_v3  ;;  %v825_v27 = vadd.f32 %v824_v48, %v823_v25  ;;  %v964_v62 = vmul.f32 %v962_v36, %v962_v36  ;;  %722 = vadd.xlane.f32.xlu1 %v721_v45 }
 0x10b   :  { %v1012_v28 = vadd.f32 %v1988_v55, %v1615_v4  ;;  %v1013_v16 = vadd.f32 %v1988_v55, %v1617_v5  ;;  %878 = vadd.xlane.f32.xlu0 %v877_v57  ;;  %v927_v12 = vmul.f32 %v920_v40, %v914_v46  ;;  %v928_v23 = vmul.f32 %v924_v54, %v915_v26 }
 0x10c   :  { %v965_v34 = vmul.f32 %v963_v63, %v963_v63  ;;  %v966_v14 = vmul.f32 %v964_v62, %v962_v36  ;;  %v1024_v19 = vrot.slane %v994_v17, %v1611_v2  ;;  %v1028_v13 = vrot.slane %v994_v17, %v1613_v3 }
 0x10d   :  { %v1014_v44 = vmax.f32 %v1012_v28, 1e-06  ;;  %v1015_v31 = vmax.f32 %v1013_v16, 1e-06  ;;  %v929_v5 = vadd.f32 %v928_v23, %v927_v12 }
 0x10e   :  { %v967_v43 = vmul.f32 %v965_v34, %v963_v63  ;;  %v979_v1 = vmul.f32 %v972_v11, %v966_v14  ;;  %826 = vadd.xlane.f32.xlu1 %v825_v27  ;;  %v100_v14 = vld [vmem:[#allocation2] sm:$0xff] }
 0x10f   :  { %v1016_v20 = vmul.f32 %v1014_v44, %v1014_v44  ;;  %v1017_v4 = vmul.f32 %v1015_v31, %v1015_v31 }
 0x110   :  { %v980_v49 = vmul.f32 %v976_v8, %v967_v43 }
 0x111   :  { %v1018_v35 = vmul.f32 %v1016_v20, %v1014_v44  ;;  %v1019_v61 = vmul.f32 %v1017_v4, %v1015_v31 }
 0x112   :  { %v981_v0 = vadd.f32 %v980_v49, %v979_v1  ;;  %930 = vadd.xlane.f32.xlu1 %v929_v5 }
 0x113   :  { %v1031_v21 = vmul.f32 %v1024_v19, %v1018_v35  ;;  %v1032_v25 = vmul.f32 %v1028_v13, %v1019_v61 }
 0x114   :  { %982 = vadd.xlane.f32.xlu0 %v981_v0 }
 0x115   :  { %v1033_v48 = vadd.f32 %v1032_v25, %v1031_v21 }
 0x117   :  { %1034 = vadd.xlane.f32.xlu1 %v1033_v48 }
 0x16b   :  { %v99_v40 = vpop.xlane.xlu1 %98 }
 0x16c   :  { %v1051_v15 = vand.u32 2147483647, %v99_v40  ;;  %v1055_v26 = vand.u32 2147483648, %v99_v40  ;;  %vm1050_vm3 = vcmp.lt.f32.partialorder %v99_v40, 0.0  ;;  %vm1049_vm4 = vcmp.eq.f32.partialorder %v99_v40, 0.0 }
 0x16e   :  { %1397 = vlog2.f32 %v1051_v15  ;;  %vm1059_vm1 = vweird.f32 %v1051_v15  ;;  %vm1061_vm2 = vcmp.eq.f32.partialorder %v1051_v15, 0.0  ;;  %vm1052_vm5 = vcmp.eq.f32.partialorder %v1051_v15, inf }
 0x16f   :  { %v151_v2 = vpop.xlane.xlu1 %150 }
 0x170   :  { %v1998_v33 = vand.u32 2147483647, %v151_v2  ;;  %v1073_v62 = vand.u32 2147483648, %v151_v2  ;;  %vm1068_vm8 = vcmp.lt.f32.partialorder %v151_v2, 0.0  ;;  %vm1067_vm9 = vcmp.eq.f32.partialorder %v151_v2, 0.0 }
 0x172   :  { %1399 = vlog2.f32 %v1998_v33  ;;  %vm1077_vm6 = vweird.f32 %v1998_v33  ;;  %vm1079_vm7 = vcmp.eq.f32.partialorder %v1998_v33, 0.0  ;;  %vm1070_vm11 = vcmp.eq.f32.partialorder %v1998_v33, inf }
 0x173   :  { %v2001_v3 = vpop.xlane.xlu1 %202 }
 0x174   :  { %v2004_v42 = vand.u32 2147483647, %v2001_v3  ;;  %v1091_v1 = vand.u32 2147483648, %v2001_v3  ;;  %vm1086_vm13 = vcmp.lt.f32.partialorder %v2001_v3, 0.0  ;;  %vm1085_vm14 = vcmp.eq.f32.partialorder %v2001_v3, 0.0 }
 0x176   :  { %1401 = vlog2.f32 %v2004_v42  ;;  %vm1095_vm10 = vweird.f32 %v2004_v42  ;;  %vm1097_vm12 = vcmp.eq.f32.partialorder %v2004_v42, 0.0 }
 0x177   :  { %v2007_v6 = vpop.xlane.xlu1 %254 }
 0x178   :  { %v1398_v10 = vpop.eup %1397  ;;  %v2010_v22 = vand.u32 2147483647, %v2007_v6 }
 0x179   :  { %v1056_v45 = vmul.f32 0.33333334, %v1398_v10  ;;  %v1109_v10 = vand.u32 2147483648, %v2007_v6 }
 0x17a   :  { %1403 = vlog2.f32 %v2010_v22  ;;  %vm1113_vm15 = vweird.f32 %v2010_v22 }
 0x17b   :  { %1405 = vpow2.f32 %v1056_v45  ;;  %v2013_v54 = vpop.xlane.xlu1 %306 }
 0x17c   :  { %v1400_v50 = vpop.eup %1399  ;;  %v2016_v63 = vand.u32 2147483647, %v2013_v54 }
 0x17d   :  { %v1074_v60 = vmul.f32 0.33333334, %v1400_v50 }
 0x17f   :  { %1407 = vpow2.f32 %v1074_v60  ;;  %v2019_v16 = vpop.xlane.xlu1 %358 }
 0x180   :  { %v1402_v36 = vpop.eup %1401  ;;  %v2022_v44 = vand.u32 2147483647, %v2019_v16 }
 0x181   :  { %v1092_v46 = vmul.f32 0.33333334, %v1402_v36 }
 0x183   :  { %1409 = vpow2.f32 %v1092_v46  ;;  %v2031_v25 = vpop.xlane.xlu1 %410 }
 0x184   :  { %v1404_v57 = vpop.eup %1403  ;;  %1411 = vlog2.f32 %v2016_v63 }
 0x185   :  { %v1406_v11 = vpop.eup %1405  ;;  %v1110_v28 = vmul.f32 0.33333334, %v1404_v57 }
 0x186   :  { %v1058_v8 = vor.u32 %v1406_v11, %v1055_v26 }
 0x187   :  { %1413 = vpow2.f32 %v1110_v28  ;;  %v2046_v11 = vpop.xlane.xlu1 %462 }
 0x188   :  { %v1060_v27 = vsel %vm1059_vm1, %v99_v40, %v1058_v8  ;;  %1415 = vlog2.f32 %v2022_v44  ;;  %v2037_v40 = vand.u32 2147483647, %v2031_v25  ;;  %vm1088_vm1 = vcmp.eq.f32.partialorder %v2004_v42, inf }
 0x189   :  { %v1408_v17 = vpop.eup %1407  ;;  %v1063_v12 = vsel %vm1061_vm2, %v1055_v26, %v1060_v27  ;;  %vm1115_vm2 = vcmp.eq.f32.partialorder %v2010_v22, 0.0  ;;  %v2052_v28 = vand.u32 2147483647, %v2046_v11 }
 0x18a   :  { %v1064_v23 = vsel %vm1050_vm3, nan, %v1063_v12  ;;  %v1076_v34 = vor.u32 %v1408_v17, %v1073_v62  ;;  %vm1104_vm3 = vcmp.lt.f32.partialorder %v2007_v6, 0.0 }
 0x18b   :  { %v1065_v31 = vsel %vm1049_vm4, 0.0, %v1064_v23  ;;  %vm1103_vm4 = vcmp.eq.f32.partialorder %v2007_v6, 0.0 }
 0x18c   :  { %v1066_v43 = vsel %vm1052_vm5, inf, %v1065_v31  ;;  %v1078_v19 = vsel %vm1077_vm6, %v151_v2, %v1076_v34  ;;  %vm1131_vm5 = vweird.f32 %v2016_v63  ;;  %vm1106_vm6 = vcmp.eq.f32.partialorder %v2010_v22, inf }
 0x18d   :  { %v1410_v20 = vpop.eup %1409  ;;  %v102_v4 = vsub.f32 %v1066_v43, %v1740_v24  ;;  %v1081_v13 = vsel %vm1079_vm7, %v1073_v62, %v1078_v19  ;;  %v1127_v62 = vand.u32 2147483648, %v2013_v54  ;;  %v2061_v19 = vpop.xlane.xlu1 %514  ;;  %vm1133_vm7 = vcmp.eq.f32.partialorder %v2016_v63, 0.0 }
 0x18e   :  { %v1412_v5 = vpop.eup %1411  ;;  %v1082_v49 = vsel %vm1068_vm8, nan, %v1081_v13  ;;  %v1094_v35 = vor.u32 %v1410_v20, %v1091_v1  ;;  %v1145_v20 = vand.u32 2147483648, %v2019_v16  ;;  %vm1122_vm8 = vcmp.lt.f32.partialorder %v2013_v54, 0.0 }
 0x18f   :  { %v103_v61 = vadd.f32 %v102_v4, %v100_v14  ;;  %v1083_v0 = vsel %vm1067_vm9, 0.0, %v1082_v49  ;;  %v1128_v21 = vmul.f32 0.33333334, %v1412_v5  ;;  %v2068_v4 = vand.u32 2147483647, %v2061_v19 }
 0x190   :  { %v1096_v48 = vsel %vm1095_vm10, %v2001_v3, %v1094_v35  ;;  %v1084_v24 = vsel %vm1070_vm11, inf, %v1083_v0  ;;  %vm1149_vm9 = vweird.f32 %v2022_v44  ;;  %vm1121_vm10 = vcmp.eq.f32.partialorder %v2013_v54, 0.0 }
 0x191   :  { %104 = vst.msk [vmem:[#allocation2] sm:$0xff] %vm53_vm0, %v103_v61  ;;  %v1414_v15 = vpop.eup %1413  ;;  %v1099_v2 = vsel %vm1097_vm12, %v1091_v1, %v1096_v48  ;;  %1417 = vpow2.f32 %v1128_v21  ;;  %v154_v45 = vsub.f32 %v1084_v24, %v1778_v47  ;;  %v2076_v24 = vpop.xlane.xlu1 %566  ;;  %vm1151_vm11 = vcmp.eq.f32.partialorder %v2022_v44, 0.0 }
 0x192   :  { %v1416_v50 = vpop.eup %1415  ;;  %v1100_v36 = vsel %vm1086_vm13, nan, %v1099_v2  ;;  %v1112_v46 = vor.u32 %v1414_v15, %v1109_v10  ;;  %1419 = vlog2.f32 %v2037_v40  ;;  %vm1124_vm12 = vcmp.eq.f32.partialorder %v2016_v63, inf }
 0x193   :  { %v1101_v57 = vsel %vm1085_vm14, 0.0, %v1100_v36  ;;  %v1146_v26 = vmul.f32 0.33333334, %v1416_v50  ;;  %v1163_v2 = vand.u32 2147483648, %v2031_v25  ;;  %vm1140_vm13 = vcmp.lt.f32.partialorder %v2019_v16, 0.0 }
 0x194   :  { %v1114_v47 = vsel %vm1113_vm15, %v2007_v6, %v1112_v46  ;;  %v1102_v8 = vsel %vm1088_vm1, inf, %v1101_v57  ;;  %vm1167_vm14 = vweird.f32 %v2037_v40  ;;  %vm1139_vm15 = vcmp.eq.f32.partialorder %v2019_v16, 0.0 }
 0x195   :  { %v1117_v3 = vsel %vm1115_vm2, %v1109_v10, %v1114_v47  ;;  %1421 = vpow2.f32 %v1146_v26  ;;  %v206_v17 = vsub.f32 %v1102_v8, %v1750_v30  ;;  %v2083_v10 = vand.u32 2147483647, %v2076_v24  ;;  %v2092_v47 = vpop.xlane.xlu1 %618 }
 0x196   :  { %v1118_v34 = vsel %vm1104_vm3, nan, %v1117_v3  ;;  %1423 = vlog2.f32 %v2052_v28  ;;  %vm1142_vm1 = vcmp.eq.f32.partialorder %v2022_v44, inf  ;;  %vm1169_vm2 = vcmp.eq.f32.partialorder %v2037_v40, 0.0 }
 0x197   :  { %v1119_v14 = vsel %vm1103_vm4, 0.0, %v1118_v34  ;;  %v2098_v3 = vand.u32 2147483647, %v2092_v47  ;;  %vm1158_vm3 = vcmp.lt.f32.partialorder %v2031_v25, 0.0  ;;  %vm1157_vm4 = vcmp.eq.f32.partialorder %v2031_v25, 0.0 }
 0x198   :  { %v152_v60 = vld [vmem:[#allocation2] sm:$0xff]  ;;  %v1120_v1 = vsel %vm1106_vm6, inf, %v1119_v14  ;;  %vm1160_vm6 = vcmp.eq.f32.partialorder %v2037_v40, inf  ;;  %v2107_v14 = vpop.xlane.xlu0 %670 }
 0x199   :  { %v155_v33 = vadd.f32 %v154_v45, %v152_v60  ;;  %v258_v5 = vsub.f32 %v1120_v1, %v1782_v52  ;;  %v1199_v1 = vand.u32 2147483648, %v2061_v19 }
 0x19b   :  { %156 = vst.msk [vmem:[#allocation2] sm:$0xff] %vm53_vm0, %v155_v33  ;;  %v1418_v27 = vpop.eup %1417 }
 0x19c   :  { %v1420_v12 = vpop.eup %1419  ;;  %v1130_v31 = vor.u32 %v1418_v27, %v1127_v62  ;;  %v1181_v27 = vand.u32 2147483648, %v2046_v11 }
 0x19d   :  { %v1164_v43 = vmul.f32 0.33333334, %v1420_v12 }
 0x19e   :  { %v1132_v30 = vsel %vm1131_vm5, %v2013_v54, %v1130_v31  ;;  %vm1185_vm5 = vweird.f32 %v2052_v28 }
 0x19f   :  { %v1422_v6 = vpop.eup %1421  ;;  %v1135_v13 = vsel %vm1133_vm7, %v1127_v62, %v1132_v30  ;;  %1425 = vpow2.f32 %v1164_v43  ;;  %vm1187_vm7 = vcmp.eq.f32.partialorder %v2052_v28, 0.0  ;;  %v2112_v30 = vand.u32 2147483647, %v2107_v14 }
 0x1a0   :  { %v1424_v49 = vpop.eup %1423  ;;  %v1136_v61 = vsel %vm1122_vm8, nan, %v1135_v13  ;;  %v1148_v0 = vor.u32 %v1422_v6, %v1145_v20  ;;  %1427 = vlog2.f32 %v2068_v4  ;;  %vm1176_vm8 = vcmp.lt.f32.partialorder %v2046_v11, 0.0 }
 0x1a1   :  { %v1137_v21 = vsel %vm1121_vm10, 0.0, %v1136_v61  ;;  %v1182_v48 = vmul.f32 0.33333334, %v1424_v49  ;;  %vm1203_vm10 = vweird.f32 %v2068_v4 }
 0x1a2   :  { %v204_v23 = vld [vmem:[#allocation2] sm:$0xff]  ;;  %v1150_v52 = vsel %vm1149_vm9, %v2019_v16, %v1148_v0  ;;  %v1138_v15 = vsel %vm1124_vm12, inf, %v1137_v21  ;;  %vm1175_vm9 = vcmp.eq.f32.partialorder %v2046_v11, 0.0  ;;  %v2122_v21 = vpop.xlane.xlu1 %722  ;;  %vm1205_vm12 = vcmp.eq.f32.partialorder %v2068_v4, 0.0 }
 0x1a3   :  { %v207_v42 = vadd.f32 %v206_v17, %v204_v23  ;;  %v1153_v54 = vsel %vm1151_vm11, %v1145_v20, %v1150_v52  ;;  %1429 = vpow2.f32 %v1182_v48  ;;  %v310_v50 = vsub.f32 %v1138_v15, %v1798_v39 }
 0x1a4   :  { %v1154_v46 = vsel %vm1140_vm13, nan, %v1153_v54  ;;  %1431 = vlog2.f32 %v2083_v10  ;;  %vm1178_vm11 = vcmp.eq.f32.partialorder %v2052_v28, inf  ;;  %v1217_v48 = vand.u32 2147483648, %v2076_v24 }
 0x1a5   :  { %208 = vst.msk [vmem:[#allocation2] sm:$0xff] %vm53_vm0, %v207_v42  ;;  %v1155_v57 = vsel %vm1139_vm15, 0.0, %v1154_v46  ;;  %v2128_v52 = vand.u32 2147483647, %v2122_v21  ;;  %vm1194_vm13 = vcmp.lt.f32.partialorder %v2061_v19, 0.0  ;;  %vm1221_vm15 = vweird.f32 %v2083_v10 }
 0x1a6   :  { %v1156_v8 = vsel %vm1142_vm1, inf, %v1155_v57  ;;  %vm1196_vm1 = vcmp.eq.f32.partialorder %v2068_v4, inf }
 0x1a7   :  { %v362_v44 = vsub.f32 %v1156_v8, %v1800_v53 }
 0x1a9   :  { %v1426_v45 = vpop.eup %1425 }
 0x1aa   :  { %v1428_v60 = vpop.eup %1427  ;;  %v1166_v33 = vor.u32 %v1426_v45, %v1163_v2 }
 0x1ab   :  { %v1200_v26 = vmul.f32 0.33333334, %v1428_v60 }
 0x1ac   :  { %v256_v35 = vld [vmem:[#allocation2] sm:$0xff]  ;;  %v1168_v39 = vsel %vm1167_vm14, %v2031_v25, %v1166_v33  ;;  %vm1193_vm14 = vcmp.eq.f32.partialorder %v2061_v19, 0.0 }
 0x1ad   :  { %v259_v22 = vadd.f32 %v258_v5, %v256_v35  ;;  %v1430_v62 = vpop.eup %1429  ;;  %v1171_v16 = vsel %vm1169_vm2, %v1163_v2, %v1168_v39  ;;  %1433 = vpow2.f32 %v1200_v26  ;;  %vm1223_vm2 = vcmp.eq.f32.partialorder %v2083_v10, 0.0 }
 0x1ae   :  { %v1432_v17 = vpop.eup %1431  ;;  %v1172_v23 = vsel %vm1158_vm3, nan, %v1171_v16  ;;  %v1184_v34 = vor.u32 %v1430_v62, %v1181_v27  ;;  %1435 = vlog2.f32 %v2098_v3  ;;  %v1235_v26 = vand.u32 2147483648, %v2092_v47 }
 0x1af   :  { %260 = vst.msk [vmem:[#allocation2] sm:$0xff] %vm53_vm0, %v259_v22  ;;  %v1173_v42 = vsel %vm1157_vm4, 0.0, %v1172_v23  ;;  %v1218_v43 = vmul.f32 0.33333334, %v1432_v17  ;;  %vm1212_vm3 = vcmp.lt.f32.partialorder %v2076_v24, 0.0  ;;  %vm1211_vm4 = vcmp.eq.f32.partialorder %v2076_v24, 0.0 }
 0x1b0   :  { %v1186_v53 = vsel %vm1185_vm5, %v2046_v11, %v1184_v34  ;;  %v1174_v25 = vsel %vm1160_vm6, inf, %v1173_v42  ;;  %vm1239_vm5 = vweird.f32 %v2098_v3  ;;  %vm1214_vm6 = vcmp.eq.f32.partialorder %v2083_v10, inf  ;;  %v2152_v34 = vpop.xlane.xlu1 %826 }
 0x1b1   :  { %v1189_v6 = vsel %vm1187_vm7, %v1181_v27, %v1186_v53  ;;  %1437 = vpow2.f32 %v1218_v43  ;;  %v414_v40 = vsub.f32 %v1174_v25, %v1814_v41  ;;  %vm1241_vm7 = vcmp.eq.f32.partialorder %v2098_v3, 0.0 }
 0x1b2   :  { %v1190_v49 = vsel %vm1176_vm8, nan, %v1189_v6  ;;  %1439 = vlog2.f32 %v2112_v30  ;;  %v2158_v42 = vand.u32 2147483647, %v2152_v34  ;;  %vm1230_vm8 = vcmp.lt.f32.partialorder %v2092_v47, 0.0 }
 0x1b3   :  { %v1191_v0 = vsel %vm1175_vm9, 0.0, %v1190_v49  ;;  %vm1229_vm9 = vcmp.eq.f32.partialorder %v2092_v47, 0.0 }
 0x1b4   :  { %v1192_v11 = vsel %vm1178_vm11, inf, %v1191_v0  ;;  %vm1232_vm11 = vcmp.eq.f32.partialorder %v2098_v3, inf }
 0x1b5   :  { %v466_v28 = vsub.f32 %v1192_v11, %v1842_v51 }
 0x1b6   :  { %v308_v36 = vld [vmem:[#allocation2] sm:$0xff] }
 0x1b7   :  { %v311_v63 = vadd.f32 %v310_v50, %v308_v36  ;;  %v1434_v20 = vpop.eup %1433 }
 0x1b8   :  { %v1436_v13 = vpop.eup %1435  ;;  %v1202_v35 = vor.u32 %v1434_v20, %v1199_v1 }
 0x1b9   :  { %312 = vst.msk [vmem:[#allocation2] sm:$0xff] %vm53_vm0, %v311_v63  ;;  %v1236_v22 = vmul.f32 0.33333334, %v1436_v13  ;;  %v2137_v63 = vpop.xlane.xlu0 %774 }
 0x1ba   :  { %v1204_v41 = vsel %vm1203_vm10, %v2061_v19, %v1202_v35  ;;  %v2142_v57 = vand.u32 2147483647, %v2137_v63  ;;  %vm1257_vm10 = vweird.f32 %v2112_v30 }
 0x1bb   :  { %v1438_v15 = vpop.eup %1437  ;;  %v1207_v2 = vsel %vm1205_vm12, %v1199_v1, %v1204_v41  ;;  %1441 = vpow2.f32 %v1236_v22  ;;  %vm1259_vm12 = vcmp.eq.f32.partialorder %v2112_v30, 0.0 }
 0x1bc   :  { %v1440_v45 = vpop.eup %1439  ;;  %v1208_v50 = vsel %vm1194_vm13, nan, %v1207_v2  ;;  %v1220_v60 = vor.u32 %v1438_v15, %v1217_v48  ;;  %1443 = vlog2.f32 %v2128_v52  ;;  %vm1248_vm13 = vcmp.lt.f32.partialorder %v2107_v14, 0.0 }
 0x1bd   :  { %v1254_v46 = vmul.f32 0.33333334, %v1440_v45  ;;  %v1209_v33 = vsel %vm1193_vm14, 0.0, %v1208_v50  ;;  %v2167_v49 = vpop.xlane.xlu0 %878  ;;  %vm1247_vm14 = vcmp.eq.f32.partialorder %v2107_v14, 0.0  ;;  %v1289_v50 = vand.u32 2147483648, %v2137_v63 }
 0x1be   :  { %v1222_v51 = vsel %vm1221_vm15, %v2076_v24, %v1220_v60  ;;  %v1210_v19 = vsel %vm1196_vm1, inf, %v1209_v33  ;;  %v1253_v24 = vand.u32 2147483648, %v2107_v14  ;;  %vm1275_vm15 = vweird.f32 %v2128_v52 }
 0x1bf   :  { %1445 = vpow2.f32 %v1254_v46  ;;  %v1225_v8 = vsel %vm1223_vm2, %v1217_v48, %v1222_v51  ;;  %v518_v4 = vsub.f32 %v1210_v19, %v1834_v18  ;;  %vm1250_vm1 = vcmp.eq.f32.partialorder %v2112_v30, inf }
 0x1c0   :  { %v360_v12 = vld [vmem:[#allocation2] sm:$0xff]  ;;  %v1226_v16 = vsel %vm1212_vm3, nan, %v1225_v8  ;;  %1447 = vlog2.f32 %v2142_v57  ;;  %vm1277_vm2 = vcmp.eq.f32.partialorder %v2128_v52, 0.0  ;;  %vm1266_vm3 = vcmp.lt.f32.partialorder %v2122_v21, 0.0 }
 0x1c1   :  { %v363_v31 = vadd.f32 %v362_v44, %v360_v12  ;;  %v1227_v12 = vsel %vm1211_vm4, 0.0, %v1226_v16  ;;  %vm1265_vm4 = vcmp.eq.f32.partialorder %v2122_v21, 0.0 }
 0x1c3   :  { %364 = vst.msk [vmem:[#allocation2] sm:$0xff] %vm53_vm0, %v363_v31  ;;  %v1228_v31 = vsel %vm1214_vm6, inf, %v1227_v12  ;;  %vm1268_vm6 = vcmp.eq.f32.partialorder %v2128_v52, inf }
 0x1c4   :  { %v570_v10 = vsub.f32 %v1228_v31, %v1852_v56 }
 0x1c5   :  { %v1442_v39 = vpop.eup %1441 }
 0x1c6   :  { %v1444_v27 = vpop.eup %1443  ;;  %v1238_v44 = vor.u32 %v1442_v39, %v1235_v26 }
 0x1c7   :  { %v1272_v23 = vmul.f32 0.33333334, %v1444_v27  ;;  %v2197_v27 = vpop.xlane.xlu0 %982 }
 0x1c8   :  { %v1240_v18 = vsel %vm1239_vm5, %v2092_v47, %v1238_v44  ;;  %v1271_v47 = vand.u32 2147483648, %v2122_v21  ;;  %vm1293_vm5 = vweird.f32 %v2142_v57  ;;  %v2203_v16 = vand.u32 2147483647, %v2197_v27 }
 0x1c9   :  { %v1446_v43 = vpop.eup %1445  ;;  %v1243_v53 = vsel %vm1241_vm7, %v1235_v26, %v1240_v18  ;;  %1449 = vpow2.f32 %v1272_v23  ;;  %vm1295_vm7 = vcmp.eq.f32.partialorder %v2142_v57, 0.0 }
 0x1ca   :  { %v412_v5 = vld [vmem:[#allocation2] sm:$0xff]  ;;  %v1448_v25 = vpop.eup %1447  ;;  %v1256_v1 = vor.u32 %v1446_v43, %v1253_v24  ;;  %v1244_v6 = vsel %vm1230_vm8, nan, %v1243_v53  ;;  %1451 = vlog2.f32 %v2158_v42  ;;  %vm1284_vm8 = vcmp.lt.f32.partialorder %v2137_v63, 0.0 }
 0x1cb   :  { %v415_v61 = vadd.f32 %v414_v40, %v412_v5  ;;  %v1290_v13 = vmul.f32 0.33333334, %v1448_v25  ;;  %v1245_v5 = vsel %vm1229_vm9, 0.0, %v1244_v6  ;;  %vm1283_vm9 = vcmp.eq.f32.partialorder %v2137_v63, 0.0 }
 0x1cc   :  { %v1258_v56 = vsel %vm1257_vm10, %v2107_v14, %v1256_v1  ;;  %v1246_v35 = vsel %vm1232_vm11, inf, %v1245_v5  ;;  %vm1311_vm10 = vweird.f32 %v2158_v42  ;;  %vm1286_vm11 = vcmp.eq.f32.partialorder %v2142_v57, inf }
 0x1cd   :  { %416 = vst.msk [vmem:[#allocation2] sm:$0xff] %vm53_vm0, %v415_v61  ;;  %v2173_v61 = vand.u32 2147483647, %v2167_v49  ;;  %v1261_v22 = vsel %vm1259_vm12, %v1253_v24, %v1258_v56  ;;  %1453 = vpow2.f32 %v1290_v13  ;;  %v622_v3 = vsub.f32 %v1246_v35, %v1870_v32 }
 0x1ce   :  { %v1262_v11 = vsel %vm1248_vm13, nan, %v1261_v22  ;;  %vm1313_vm12 = vcmp.eq.f32.partialorder %v2158_v42, 0.0  ;;  %v1325_v25 = vand.u32 2147483648, %v2167_v49  ;;  %vm1302_vm13 = vcmp.lt.f32.partialorder %v2152_v34, 0.0 }
 0x1cf   :  { %1455 = vlog2.f32 %v2173_v61 }
 0x1d3   :  { %v1450_v0 = vpop.eup %1449 }
 0x1d4   :  { %v464_v54 = vld [vmem:[#allocation2] sm:$0xff]  ;;  %v1452_v41 = vpop.eup %1451  ;;  %v1274_v15 = vor.u32 %v1450_v0, %v1271_v47 }
 0x1d5   :  { %v467_v36 = vadd.f32 %v466_v28, %v464_v54  ;;  %v1263_v28 = vsel %vm1247_vm14, 0.0, %v1262_v11  ;;  %v1308_v45 = vmul.f32 0.33333334, %v1452_v41  ;;  %v2182_v54 = vpop.xlane.xlu1 %930  ;;  %vm1301_vm14 = vcmp.eq.f32.partialorder %v2152_v34, 0.0 }
 0x1d6   :  { %v1276_v32 = vsel %vm1275_vm15, %v2122_v21, %v1274_v15  ;;  %v1264_v14 = vsel %vm1250_vm1, inf, %v1263_v28  ;;  %v2188_v60 = vand.u32 2147483647, %v2182_v54  ;;  %v1307_v21 = vand.u32 2147483648, %v2152_v34 }
 0x1d7   :  { %468 = vst.msk [vmem:[#allocation2] sm:$0xff] %vm53_vm0, %v467_v36  ;;  %v1454_v36 = vpop.eup %1453  ;;  %v1279_v30 = vsel %vm1277_vm2, %v1271_v47, %v1276_v32  ;;  %1457 = vpow2.f32 %v1308_v45  ;;  %v674_v46 = vsub.f32 %v1264_v14, %v1878_v59  ;;  %vm1329_vm15 = vweird.f32 %v2173_v61 }
 0x1d8   :  { %v1292_v51 = vor.u32 %v1454_v36, %v1289_v50  ;;  %v1280_v26 = vsel %vm1266_vm3, nan, %v1279_v30  ;;  %1459 = vlog2.f32 %v2188_v60  ;;  %vm1304_vm1 = vcmp.eq.f32.partialorder %v2158_v42, inf }
 0x1d9   :  { %v1456_v33 = vpop.eup %1455  ;;  %v1281_v8 = vsel %vm1265_vm4, 0.0, %v1280_v26  ;;  %vm1331_vm2 = vcmp.eq.f32.partialorder %v2173_v61, 0.0  ;;  %vm1320_vm3 = vcmp.lt.f32.partialorder %v2167_v49, 0.0  ;;  %vm1319_vm4 = vcmp.eq.f32.partialorder %v2167_v49, 0.0 }
 0x1da   :  { %v1294_v59 = vsel %vm1293_vm5, %v2137_v63, %v1292_v51  ;;  %vm1347_vm5 = vweird.f32 %v2188_v60 }
 0x1de   :  { %v516_v62 = vld [vmem:[#allocation2] sm:$0xff] }
 0x1df   :  { %v519_v17 = vadd.f32 %v518_v4, %v516_v62  ;;  %v1326_v4 = vmul.f32 0.33333334, %v1456_v33  ;;  %v1282_v62 = vsel %vm1268_vm6, inf, %v1281_v8  ;;  %vm1322_vm6 = vcmp.eq.f32.partialorder %v2173_v61, inf }
 0x1e0   :  { %v726_v52 = vsub.f32 %v1282_v62, %v1902_v38 }
 0x1e1   :  { %520 = vst.msk [vmem:[#allocation2] sm:$0xff] %vm53_vm0, %v519_v17  ;;  %v1458_v44 = vpop.eup %1457  ;;  %v1297_v17 = vsel %vm1295_vm7, %v1289_v50, %v1294_v59  ;;  %1461 = vpow2.f32 %v1326_v4  ;;  %vm1349_vm7 = vcmp.eq.f32.partialorder %v2188_v60, 0.0  ;;  %v1361_v50 = vand.u32 2147483648, %v2197_v27 }
 0x1e2   :  { %v1460_v12 = vpop.eup %1459  ;;  %v1298_v23 = vsel %vm1284_vm8, nan, %v1297_v17  ;;  %v1310_v24 = vor.u32 %v1458_v44, %v1307_v21  ;;  %1463 = vlog2.f32 %v2203_v16  ;;  %vm1338_vm8 = vcmp.lt.f32.partialorder %v2182_v54, 0.0 }
 0x1e3   :  { %v1299_v43 = vsel %vm1283_vm9, 0.0, %v1298_v23  ;;  %v1344_v53 = vmul.f32 0.33333334, %v1460_v12  ;;  %vm1337_vm9 = vcmp.eq.f32.partialorder %v2182_v54, 0.0 }
 0x1e4   :  { %v1312_v38 = vsel %vm1311_vm10, %v2152_v34, %v1310_v24  ;;  %v1300_v63 = vsel %vm1286_vm11, inf, %v1299_v43  ;;  %vm1365_vm10 = vweird.f32 %v2203_v16  ;;  %vm1340_vm11 = vcmp.eq.f32.partialorder %v2188_v60, inf }
 0x1e5   :  { %v1315_v57 = vsel %vm1313_vm12, %v1307_v21, %v1312_v38  ;;  %1465 = vpow2.f32 %v1344_v53  ;;  %v778_v6 = vsub.f32 %v1300_v63, %v1912_v7  ;;  %vm1367_vm12 = vcmp.eq.f32.partialorder %v2203_v16, 0.0 }
 0x1e6   :  { %v1316_v56 = vsel %vm1302_vm13, nan, %v1315_v57  ;;  %vm1356_vm13 = vcmp.lt.f32.partialorder %v2197_v27, 0.0 }
 0x1e7   :  { %v1317_v47 = vsel %vm1301_vm14, 0.0, %v1316_v56  ;;  %vm1355_vm14 = vcmp.eq.f32.partialorder %v2197_v27, 0.0 }
 0x1e8   :  { %v568_v20 = vld [vmem:[#allocation2] sm:$0xff]  ;;  %v1318_v7 = vsel %vm1304_vm1, inf, %v1317_v47  ;;  %vm1358_vm1 = vcmp.eq.f32.partialorder %v2203_v16, inf }
 0x1e9   :  { %v571_v40 = vadd.f32 %v570_v10, %v568_v20  ;;  %v2212_v10 = vpop.xlane.xlu1 %1034  ;;  %v830_v11 = vsub.f32 %v1318_v7, %v1930_v58 }
 0x1ea   :  { %v2218_v1 = vand.u32 2147483647, %v2212_v10 }
 0x1eb   :  { %572 = vst.msk [vmem:[#allocation2] sm:$0xff] %vm53_vm0, %v571_v40  ;;  %v1462_v20 = vpop.eup %1461 }
 0x1ec   :  { %v1464_v40 = vpop.eup %1463  ;;  %v1328_v13 = vor.u32 %v1462_v20, %v1325_v25  ;;  %1467 = vlog2.f32 %v2218_v1 }
 0x1ed   :  { %v1362_v0 = vmul.f32 0.33333334, %v1464_v40 }
 0x1ee   :  { %v1330_v22 = vsel %vm1329_vm15, %v2167_v49, %v1328_v13  ;;  %vm1383_vm15 = vweird.f32 %v2218_v1 }
 0x1ef   :  { %v1466_v34 = vpop.eup %1465  ;;  %v1333_v41 = vsel %vm1331_vm2, %v1325_v25, %v1330_v22  ;;  %1469 = vpow2.f32 %v1362_v0  ;;  %vm1385_vm2 = vcmp.eq.f32.partialorder %v2218_v1, 0.0 }
 0x1f0   :  { %v1334_v42 = vsel %vm1320_vm3, nan, %v1333_v41  ;;  %vm1374_vm3 = vcmp.lt.f32.partialorder %v2212_v10, 0.0 }
 0x1f1   :  { %v1335_v45 = vsel %vm1319_vm4, 0.0, %v1334_v42  ;;  %vm1373_vm4 = vcmp.eq.f32.partialorder %v2212_v10, 0.0 }
 0x1f2   :  { %v620_v48 = vld [vmem:[#allocation2] sm:$0xff]  ;;  %v1336_v58 = vsel %vm1322_vm6, inf, %v1335_v45 }
 0x1f3   :  { %v623_v2 = vadd.f32 %v622_v3, %v620_v48  ;;  %v1343_v3 = vand.u32 2147483648, %v2182_v54  ;;  %v882_v30 = vsub.f32 %v1336_v58, %v1942_v29  ;;  %v1379_v29 = vand.u32 2147483648, %v2212_v10 }
 0x1f5   :  { %624 = vst.msk [vmem:[#allocation2] sm:$0xff] %vm53_vm0, %v623_v2  ;;  %v1346_v2 = vor.u32 %v1466_v34, %v1343_v3 }
 0x1f6   :  { %v1468_v48 = vpop.eup %1467 }
 0x1f7   :  { %v1380_v32 = vmul.f32 0.33333334, %v1468_v48  ;;  %v1348_v14 = vsel %vm1347_vm5, %v2182_v54, %v1346_v2  ;;  %vm1376_vm5 = vcmp.eq.f32.partialorder %v2218_v1, inf }
 0x1f8   :  { %v1351_v36 = vsel %vm1349_vm7, %v1343_v3, %v1348_v14 }
 0x1f9   :  { %v1470_v49 = vpop.eup %1469  ;;  %1471 = vpow2.f32 %v1380_v32  ;;  %v1352_v61 = vsel %vm1338_vm8, nan, %v1351_v36 }
 0x1fa   :  { %v1364_v33 = vor.u32 %v1470_v49, %v1361_v50 }
 0x1fc   :  { %v672_v19 = vld [vmem:[#allocation2] sm:$0xff]  ;;  %v1366_v26 = vsel %vm1365_vm10, %v2197_v27, %v1364_v33 }
 0x1fd   :  { %v675_v39 = vadd.f32 %v674_v46, %v672_v19  ;;  %v1353_v19 = vsel %vm1337_vm9, 0.0, %v1352_v61  ;;  %v1369_v54 = vsel %vm1367_vm12, %v1361_v50, %v1366_v26 }
 0x1fe   :  { %v1370_v62 = vsel %vm1356_vm13, nan, %v1369_v54 }
 0x1ff   :  { %676 = vst.msk [vmem:[#allocation2] sm:$0xff] %vm53_vm0, %v675_v39  ;;  %v1354_v39 = vsel %vm1340_vm11, inf, %v1353_v19  ;;  %v1371_v44 = vsel %vm1355_vm14, 0.0, %v1370_v62 }
 0x200   :  { %v934_v4 = vsub.f32 %v1354_v39, %v1960_v9 }
 0x203   :  { %v1472_v8 = vpop.eup %1471 }
 0x204   :  { %v1382_v21 = vor.u32 %v1472_v8, %v1379_v29 }
 0x206   :  { %v724_v18 = vld [vmem:[#allocation2] sm:$0xff]  ;;  %v1384_v17 = vsel %vm1383_vm15, %v2212_v10, %v1382_v21 }
 0x207   :  { %v727_v31 = vadd.f32 %v726_v52, %v724_v18  ;;  %v1372_v52 = vsel %vm1358_vm1, inf, %v1371_v44  ;;  %v1387_v9 = vsel %vm1385_vm2, %v1379_v29, %v1384_v17 }
 0x208   :  { %v986_v27 = vsub.f32 %v1372_v52, %v1974_v37  ;;  %v1388_v23 = vsel %vm1374_vm3, nan, %v1387_v9 }
 0x209   :  { %728 = vst.msk [vmem:[#allocation2] sm:$0xff] %vm53_vm0, %v727_v31  ;;  %v1389_v16 = vsel %vm1373_vm4, 0.0, %v1388_v23 }
 0x20a   :  { %v1390_v24 = vsel %vm1376_vm5, inf, %v1389_v16 }
 0x20b   :  { %v1038_v31 = vsub.f32 %v1390_v24, %v1988_v55 }
 0x210   :  { %v776_v5 = vld [vmem:[#allocation2] sm:$0xff] }
 0x211   :  { %v779_v35 = vadd.f32 %v778_v6, %v776_v5 }
 0x213   :  { %780 = vst.msk [vmem:[#allocation2] sm:$0xff] %vm53_vm0, %v779_v35 }
 0x21a   :  { %v828_v15 = vld [vmem:[#allocation2] sm:$0xff] }
 0x21b   :  { %v831_v28 = vadd.f32 %v830_v11, %v828_v15 }
 0x21d   :  { %832 = vst.msk [vmem:[#allocation2] sm:$0xff] %vm53_vm0, %v831_v28 }
 0x224   :  { %v880_v46 = vld [vmem:[#allocation2] sm:$0xff] }
 0x225   :  { %v883_v51 = vadd.f32 %v882_v30, %v880_v46 }
 0x227   :  { %884 = vst.msk [vmem:[#allocation2] sm:$0xff] %vm53_vm0, %v883_v51 }
 0x22e   :  { %v932_v59 = vld [vmem:[#allocation2] sm:$0xff] }
 0x22f   :  { %v935_v60 = vadd.f32 %v934_v4, %v932_v59 }
 0x231   :  { %936 = vst.msk [vmem:[#allocation2] sm:$0xff] %vm53_vm0, %v935_v60 }
 0x238   :  { %v984_v12 = vld [vmem:[#allocation2] sm:$0xff] }
 0x239   :  { %v987_v18 = vadd.f32 %v986_v27, %v984_v12 }
 0x23b   :  { %988 = vst.msk [vmem:[#allocation2] sm:$0xff] %vm53_vm0, %v987_v18 }
 0x242   :  { %v1036_v43 = vld [vmem:[#allocation2] sm:$0xff] }
 0x243   :  { %v1039_v53 = vadd.f32 %v1038_v31, %v1036_v43 }
 0x245   :  { %1040 = vst.msk [vmem:[#allocation2] sm:$0xff] %vm53_vm0, %v1039_v53 }
 0x24c   :  { %v1041_v38 = vld [vmem:[#allocation2] sm:$0xff] }
 0x24d   :  { %1042 = vst.msk [vmem:[%s2270_s3] sm:$0xff] %vm53_vm0, %v1041_v38 }
 0x24e   :  { %1047 = vsyncpa [#allocation4], 1 }
 0x24f   :  { %1048 = vsyncpa [#allocation6], 1 }

</bundles_post_ra>
